<compile_context>
chip_gen: v6e
topology: v6e:2x2x1
jax: 0.10.0
libtpu: 0.0.40
codegen_flags: <defaults>
</compile_context>

<pallas_src>
import functools

import jax
import jax.numpy as jnp
from jax.experimental import pallas as pl
from jax.experimental.pallas import tpu as pltpu


def _round_up(x: int, m: int) -> int:
    return (x + m - 1) // m * m


def _leaky_relu(x, negative_slope=0.2):
    # max(x, 0.2*x) == LeakyReLU(0.2) for slope in (0, 1).
    return jnp.maximum(x, negative_slope * x)


def fnn_generator_kernel(
    x_ref,
    w1_ref, b1_ref,
    w2_ref, b2_ref,
    w3_ref, b3_ref,
    w4_ref, b4_ref,
    o_ref,
):
    # x_ref and all w refs are already bf16; MXU accumulates in f32.
    # Bias add / LeakyReLU / tanh stay f32 on the VPU/EUP (portable to v5e).
    h = jnp.dot(x_ref[...], w1_ref[...],
                preferred_element_type=jnp.float32) + b1_ref[...]
    h = _leaky_relu(h)

    h = jnp.dot(h.astype(jnp.bfloat16), w2_ref[...],
                preferred_element_type=jnp.float32) + b2_ref[...]
    h = _leaky_relu(h)

    h = jnp.dot(h.astype(jnp.bfloat16), w3_ref[...],
                preferred_element_type=jnp.float32) + b3_ref[...]
    h = _leaky_relu(h)

    h = jnp.dot(h.astype(jnp.bfloat16), w4_ref[...],
                preferred_element_type=jnp.float32) + b4_ref[...]
    o_ref[...] = jnp.tanh(h).astype(o_ref.dtype)


def _pinned(shape):
    """Full-array block, resident across all grid steps; single-buffered when
    supported (constant index_map -> DMA is elided after the first step)."""
    try:
        return pl.BlockSpec(shape, lambda i: (0, 0), pipeline_mode=pl.Buffered(1))
    except TypeError:
        return pl.BlockSpec(shape, lambda i: (0, 0))


def _choose_bm(B: int, block_m: int) -> int:
    """Batch tile: <= block_m, multiple of 8, >=2 tiles for mid/large batches
    (so both v7x TensorCores get work), minimal padding overshoot."""
    b_r = _round_up(B, 8)
    if b_r <= block_m:
        n_tiles = 2 if B > 16 else 1
    else:
        n_tiles = pl.cdiv(B, block_m)
        if n_tiles > 1 and n_tiles % 2 == 1:
            n_tiles += 1  # even tile count -> balanced split across 2 TCs
    return max(_round_up(pl.cdiv(B, n_tiles), 8), 8)


def prepare_params(params):
    """One-time weight preparation (call OUTSIDE the per-forward path):
    pad K of layer 1 / N of layer 4 to multiples of 128, cast weights to bf16
    for the MXU, keep biases f32. Zero padding cannot perturb real outputs."""
    in_dims = params["w1"].shape[0]
    out_dims = params["w4"].shape[1]
    k_pad = _round_up(in_dims, 128)
    n_pad = _round_up(out_dims, 128)
    return {
        "w1": jnp.pad(params["w1"], ((0, k_pad - in_dims), (0, 0))).astype(jnp.bfloat16),
        "b1": params["b1"].astype(jnp.float32),
        "w2": params["w2"].astype(jnp.bfloat16),
        "b2": params["b2"].astype(jnp.float32),
        "w3": params["w3"].astype(jnp.bfloat16),
        "b3": params["b3"].astype(jnp.float32),
        "w4": jnp.pad(params["w4"], ((0, 0), (0, n_pad - out_dims))).astype(jnp.bfloat16),
        "b4": jnp.pad(params["b4"], ((0, 0), (0, n_pad - out_dims))).astype(jnp.float32),
    }


@functools.partial(jax.jit, static_argnames=("out_dims", "block_m"))
def fnn_generator_forward(x, prepped, *, out_dims, block_m=512):
    """x: (B, in_dims) f32. prepped: dict from prepare_params(). -> (B, out_dims) f32."""
    B, in_dims = x.shape
    k_pad = prepped["w1"].shape[0]   # in_dims rounded to 128
    n_pad = prepped["w4"].shape[1]   # out_dims rounded to 128

    bm = _choose_bm(B, block_m)
    b_pad = _round_up(B, bm)

    # Pad ragged batch / K and feed the kernel bf16 x directly.
    x_p = jnp.pad(x, ((0, b_pad - B), (0, k_pad - in_dims))).astype(jnp.bfloat16)

    grid = (b_pad // bm,)
    in_specs = [
        pl.BlockSpec((bm, k_pad), lambda i: (i, 0)),   # x: tiled over batch
        _pinned(prepped["w1"].shape), _pinned(prepped["b1"].shape),
        _pinned(prepped["w2"].shape), _pinned(prepped["b2"].shape),
        _pinned(prepped["w3"].shape), _pinned(prepped["b3"].shape),
        _pinned(prepped["w4"].shape), _pinned(prepped["b4"].shape),
    ]
    out_spec = pl.BlockSpec((bm, n_pad), lambda i: (i, 0))

    out = pl.pallas_call(
        fnn_generator_kernel,
        out_shape=jax.ShapeDtypeStruct((b_pad, n_pad), jnp.float32),
        grid_spec=pltpu.PrefetchScalarGridSpec(
            num_scalar_prefetch=0,
            grid=grid,
            in_specs=in_specs,
            out_specs=out_spec,
        ),
        compiler_params=pltpu.CompilerParams(
            dimension_semantics=("parallel",),     # batch tiles shard across TCs (v7x)
            vmem_limit_bytes=48 * 1024 * 1024,     # safe under v7x's 64 MiB/TC
        ),
    )(x_p,
      prepped["w1"], prepped["b1"],
      prepped["w2"], prepped["b2"],
      prepped["w3"], prepped["b3"],
      prepped["w4"], prepped["b4"])

    return out[:B, :out_dims]


def init_params(key, in_dims, out_dims):
    """PyTorch Linear default init: U(-1/sqrt(fan_in), 1/sqrt(fan_in))."""
    dims = [(in_dims, 256), (256, 512), (512, 1024), (1024, out_dims)]
    params = {}
    for idx, (fan_in, fan_out) in enumerate(dims, start=1):
        key, kw, kb = jax.random.split(key, 3)
        bound = 1.0 / jnp.sqrt(jnp.float32(fan_in))
        params[f"w{idx}"] = jax.random.uniform(
            kw, (fan_in, fan_out), jnp.float32, minval=-bound, maxval=bound)
        params[f"b{idx}"] = jax.random.uniform(
            kb, (1, fan_out), jnp.float32, minval=-bound, maxval=bound)
    return params


def reference_forward(x, params):
    """f32 reference; x and weights rounded through bf16 to mirror the kernel's
    MXU inputs (per-layer activation rounding still differs -> loose atol)."""
    h = x.astype(jnp.bfloat16).astype(jnp.float32)
    for idx in range(1, 5):
        w = params[f"w{idx}"].astype(jnp.bfloat16).astype(jnp.float32)
        h = h @ w + params[f"b{idx}"]
        if idx < 4:
            h = jnp.where(h > 0, h, 0.2 * h)
    return jnp.tanh(h)


if __name__ == "__main__":
    # Small shapes; batch deliberately not a multiple of 8 to exercise the
    # ragged-batch padding path, out_dims=32 exercises the lane padding path.
    in_dims, out_dims, batch = 64, 32, 12

    key = jax.random.PRNGKey(0)
    key, kx = jax.random.split(key)
    x = jax.random.normal(kx, (batch, in_dims), jnp.float32)
    params = init_params(key, in_dims, out_dims)

    # One-time weight preparation (padded bf16) -- outside the per-call path.
    prepped = prepare_params(params)

    out = fnn_generator_forward(x, prepped, out_dims=out_dims)
    out = jax.block_until_ready(out)

    ref = reference_forward(x, params)
    assert out.shape == (batch, out_dims)
    # bf16 activation rounding inside the kernel => loosened tolerance.
    assert jnp.allclose(out, ref, atol=3e-2, rtol=0.0), "mismatch vs JAX reference"

    print("KERNEL_OK")
</pallas_src>

<mosaic_0001>
module attributes {stable_mosaic.version = 11 : i64} {
  func.func @fnn_generator_kernel(%arg0: i32, %arg1: memref<16x128xbf16, #tpu.memory_space<vmem>>, %arg2: memref<128x256xbf16, #tpu.memory_space<vmem>>, %arg3: memref<1x256xf32, #tpu.memory_space<vmem>>, %arg4: memref<256x512xbf16, #tpu.memory_space<vmem>>, %arg5: memref<1x512xf32, #tpu.memory_space<vmem>>, %arg6: memref<512x1024xbf16, #tpu.memory_space<vmem>>, %arg7: memref<1x1024xf32, #tpu.memory_space<vmem>>, %arg8: memref<1024x128xbf16, #tpu.memory_space<vmem>>, %arg9: memref<1x128xf32, #tpu.memory_space<vmem>>, %arg10: memref<16x128xf32, #tpu.memory_space<vmem>>) attributes {dimension_semantics = [#tpu.dimension_semantics<parallel>], iteration_bounds = array<i64: 1>, scalar_prefetch = 0 : i64, scratch_operands = 0 : i64, tpu.core_type = #tpu.core_type<tc>, window_params = [{transform_indices = @transform_0, window_bounds = array<i64: 16, 128>}, {pipeline_mode = #tpu.pipeline_mode<synchronous>, transform_indices = @transform_1, window_bounds = array<i64: 128, 256>}, {pipeline_mode = #tpu.pipeline_mode<synchronous>, transform_indices = @transform_2, window_bounds = array<i64: 1, 256>}, {pipeline_mode = #tpu.pipeline_mode<synchronous>, transform_indices = @transform_3, window_bounds = array<i64: 256, 512>}, {pipeline_mode = #tpu.pipeline_mode<synchronous>, transform_indices = @transform_4, window_bounds = array<i64: 1, 512>}, {pipeline_mode = #tpu.pipeline_mode<synchronous>, transform_indices = @transform_5, window_bounds = array<i64: 512, 1024>}, {pipeline_mode = #tpu.pipeline_mode<synchronous>, transform_indices = @transform_6, window_bounds = array<i64: 1, 1024>}, {pipeline_mode = #tpu.pipeline_mode<synchronous>, transform_indices = @transform_7, window_bounds = array<i64: 1024, 128>}, {pipeline_mode = #tpu.pipeline_mode<synchronous>, transform_indices = @transform_8, window_bounds = array<i64: 1, 128>}, {transform_indices = @transform_9, window_bounds = array<i64: 16, 128>}]} {
    %c0 = arith.constant 0 : index
    %c0_0 = arith.constant 0 : index
    %0 = vector.load %arg1[%c0, %c0_0] : memref<16x128xbf16, #tpu.memory_space<vmem>>, vector<16x128xbf16>
    %c0_1 = arith.constant 0 : index
    %c0_2 = arith.constant 0 : index
    %1 = vector.load %arg2[%c0_1, %c0_2] : memref<128x256xbf16, #tpu.memory_space<vmem>>, vector<128x256xbf16>
    %cst = arith.constant dense<0.000000e+00> : vector<16x256xf32>
    %2 = tpu.matmul %0, %1, %cst {dimension_numbers = #tpu.dot_dimension_numbers<[1], [0], [0], [1], [0, 0, 1, 1], [], []>} : vector<16x128xbf16>, vector<128x256xbf16>, vector<16x256xf32> -> vector<16x256xf32>
    %c0_3 = arith.constant 0 : index
    %c0_4 = arith.constant 0 : index
    %3 = vector.load %arg3[%c0_3, %c0_4] : memref<1x256xf32, #tpu.memory_space<vmem>>, vector<1x256xf32>
    %4 = vector.broadcast %3 : vector<1x256xf32> to vector<16x256xf32>
    %5 = arith.addf %2, %4 : vector<16x256xf32>
    %cst_5 = arith.constant 2.000000e-01 : f32
    %6 = vector.broadcast %cst_5 : f32 to vector<16x256xf32>
    %7 = arith.mulf %6, %5 : vector<16x256xf32>
    %8 = arith.maximumf %5, %7 : vector<16x256xf32>
    %9 = arith.truncf %8 : vector<16x256xf32> to vector<16x256xbf16>
    %c0_6 = arith.constant 0 : index
    %c0_7 = arith.constant 0 : index
    %10 = vector.load %arg4[%c0_6, %c0_7] : memref<256x512xbf16, #tpu.memory_space<vmem>>, vector<256x512xbf16>
    %cst_8 = arith.constant dense<0.000000e+00> : vector<16x512xf32>
    %11 = tpu.matmul %9, %10, %cst_8 {dimension_numbers = #tpu.dot_dimension_numbers<[1], [0], [0], [1], [0, 0, 1, 1], [], []>} : vector<16x256xbf16>, vector<256x512xbf16>, vector<16x512xf32> -> vector<16x512xf32>
    %c0_9 = arith.constant 0 : index
    %c0_10 = arith.constant 0 : index
    %12 = vector.load %arg5[%c0_9, %c0_10] : memref<1x512xf32, #tpu.memory_space<vmem>>, vector<1x512xf32>
    %13 = vector.broadcast %12 : vector<1x512xf32> to vector<16x512xf32>
    %14 = arith.addf %11, %13 : vector<16x512xf32>
    %cst_11 = arith.constant 2.000000e-01 : f32
    %15 = vector.broadcast %cst_11 : f32 to vector<16x512xf32>
    %16 = arith.mulf %15, %14 : vector<16x512xf32>
    %17 = arith.maximumf %14, %16 : vector<16x512xf32>
    %18 = arith.truncf %17 : vector<16x512xf32> to vector<16x512xbf16>
    %c0_12 = arith.constant 0 : index
    %c0_13 = arith.constant 0 : index
    %19 = vector.load %arg6[%c0_12, %c0_13] : memref<512x1024xbf16, #tpu.memory_space<vmem>>, vector<512x1024xbf16>
    %cst_14 = arith.constant dense<0.000000e+00> : vector<16x1024xf32>
    %20 = tpu.matmul %18, %19, %cst_14 {dimension_numbers = #tpu.dot_dimension_numbers<[1], [0], [0], [1], [0, 0, 1, 1], [], []>} : vector<16x512xbf16>, vector<512x1024xbf16>, vector<16x1024xf32> -> vector<16x1024xf32>
    %c0_15 = arith.constant 0 : index
    %c0_16 = arith.constant 0 : index
    %21 = vector.load %arg7[%c0_15, %c0_16] : memref<1x1024xf32, #tpu.memory_space<vmem>>, vector<1x1024xf32>
    %22 = vector.broadcast %21 : vector<1x1024xf32> to vector<16x1024xf32>
    %23 = arith.addf %20, %22 : vector<16x1024xf32>
    %cst_17 = arith.constant 2.000000e-01 : f32
    %24 = vector.broadcast %cst_17 : f32 to vector<16x1024xf32>
    %25 = arith.mulf %24, %23 : vector<16x1024xf32>
    %26 = arith.maximumf %23, %25 : vector<16x1024xf32>
    %27 = arith.truncf %26 : vector<16x1024xf32> to vector<16x1024xbf16>
    %c0_18 = arith.constant 0 : index
    %c0_19 = arith.constant 0 : index
    %28 = vector.load %arg8[%c0_18, %c0_19] : memref<1024x128xbf16, #tpu.memory_space<vmem>>, vector<1024x128xbf16>
    %cst_20 = arith.constant dense<0.000000e+00> : vector<16x128xf32>
    %29 = tpu.matmul %27, %28, %cst_20 {dimension_numbers = #tpu.dot_dimension_numbers<[1], [0], [0], [1], [0, 0, 1, 1], [], []>} : vector<16x1024xbf16>, vector<1024x128xbf16>, vector<16x128xf32> -> vector<16x128xf32>
    %c0_21 = arith.constant 0 : index
    %c0_22 = arith.constant 0 : index
    %30 = vector.load %arg9[%c0_21, %c0_22] : memref<1x128xf32, #tpu.memory_space<vmem>>, vector<1x128xf32>
    %31 = vector.broadcast %30 : vector<1x128xf32> to vector<16x128xf32>
    %32 = arith.addf %29, %31 : vector<16x128xf32>
    %33 = math.tanh %32 : vector<16x128xf32>
    %c0_23 = arith.constant 0 : index
    %c0_24 = arith.constant 0 : index
    %34 = vector.load %arg10[%c0_23, %c0_24] : memref<16x128xf32, #tpu.memory_space<vmem>>, vector<16x128xf32>
    tpu.vector_store %arg10[%c0_23, %c0_24], %33 {strides = array<i32>} : memref<16x128xf32, #tpu.memory_space<vmem>>, vector<16x128xf32>,
    return
  }
  func.func @transform_0(%arg0: i32) -> (i32, i32) {
    %c0_i32 = arith.constant 0 : i32
    %c0_i32_0 = arith.constant 0 : i32
    return %arg0, %c0_i32 : i32, i32
  }
  func.func @transform_1(%arg0: i32) -> (i32, i32) {
    %c0_i32 = arith.constant 0 : i32
    %c0_i32_0 = arith.constant 0 : i32
    %c0_i32_1 = arith.constant 0 : i32
    return %c0_i32, %c0_i32_0 : i32, i32
  }
  func.func @transform_2(%arg0: i32) -> (i32, i32) {
    %c0_i32 = arith.constant 0 : i32
    %c0_i32_0 = arith.constant 0 : i32
    %c0_i32_1 = arith.constant 0 : i32
    return %c0_i32, %c0_i32_0 : i32, i32
  }
  func.func @transform_3(%arg0: i32) -> (i32, i32) {
    %c0_i32 = arith.constant 0 : i32
    %c0_i32_0 = arith.constant 0 : i32
    %c0_i32_1 = arith.constant 0 : i32
    return %c0_i32, %c0_i32_0 : i32, i32
  }
  func.func @transform_4(%arg0: i32) -> (i32, i32) {
    %c0_i32 = arith.constant 0 : i32
    %c0_i32_0 = arith.constant 0 : i32
    %c0_i32_1 = arith.constant 0 : i32
    return %c0_i32, %c0_i32_0 : i32, i32
  }
  func.func @transform_5(%arg0: i32) -> (i32, i32) {
    %c0_i32 = arith.constant 0 : i32
    %c0_i32_0 = arith.constant 0 : i32
    %c0_i32_1 = arith.constant 0 : i32
    return %c0_i32, %c0_i32_0 : i32, i32
  }
  func.func @transform_6(%arg0: i32) -> (i32, i32) {
    %c0_i32 = arith.constant 0 : i32
    %c0_i32_0 = arith.constant 0 : i32
    %c0_i32_1 = arith.constant 0 : i32
    return %c0_i32, %c0_i32_0 : i32, i32
  }
  func.func @transform_7(%arg0: i32) -> (i32, i32) {
    %c0_i32 = arith.constant 0 : i32
    %c0_i32_0 = arith.constant 0 : i32
    %c0_i32_1 = arith.constant 0 : i32
    return %c0_i32, %c0_i32_0 : i32, i32
  }
  func.func @transform_8(%arg0: i32) -> (i32, i32) {
    %c0_i32 = arith.constant 0 : i32
    %c0_i32_0 = arith.constant 0 : i32
    %c0_i32_1 = arith.constant 0 : i32
    return %c0_i32, %c0_i32_0 : i32, i32
  }
  func.func @transform_9(%arg0: i32) -> (i32, i32) {
    %c0_i32 = arith.constant 0 : i32
    %c0_i32_0 = arith.constant 0 : i32
    return %arg0, %c0_i32 : i32, i32
  }
}

</mosaic_0001>

<bundles_post_ra>
// kernel: fnn_generator_forward.1
= control target key start
LH: loop header
LB: loop body
LE: loop exit
PB: predicated region body
PF: predicated region fallthrough
CT: control target
= control target key end

     0   :  { %14 = vsyncpa [#allocation3], 0  ;;  %s4417_s0 = inlined_call_operand.vmem [shape: bf16[16,128], index: 0, kind: input, shape index: {}]   ;;  %s4418_s1 = inlined_call_operand.hbm [shape: bf16[128,256], index: 1, kind: input, shape index: {}]   ;;  %s4419_s2 = inlined_call_operand.vmem [shape: f32[1,256], index: 2, kind: input, shape index: {}]   ;;  %s4420_s3 = inlined_call_operand.hbm [shape: bf16[256,512], index: 3, kind: input, shape index: {}]   ;;  %s4421_s4 = inlined_call_operand.vmem [shape: f32[1,512], index: 4, kind: input, shape index: {}]   ;;  %s4422_s5 = inlined_call_operand.hbm [shape: bf16[512,1024], index: 5, kind: input, shape index: {}]   ;;  %s4423_s6 = inlined_call_operand.vmem [shape: f32[1,1024], index: 6, kind: input, shape index: {}]   ;;  %s4424_s7 = inlined_call_operand.hbm [shape: bf16[1024,128], index: 7, kind: input, shape index: {}]   ;;  %s4425_s8 = inlined_call_operand.vmem [shape: f32[1,128], index: 8, kind: input, shape index: {}]   ;;  %s4426_s9 = inlined_call_operand.hbm [shape: f32[16,128], index: 9, kind: output, shape index: {}]  }
   0x1   :  { %15 = vsyncpa [#allocation6], 0 }
   0x2   :  { %16 = vsyncpa [#allocation9], 0 }
   0x3   :  { %17 = vsyncpa [#allocation4], 0  ;;  %s4239_s30 = smov [#allocation5]  }
   0x4   :  { %s39_s10 = sshll.u32 %s4239_s30, 4  ;;  %s40_s10 = int_to_ptr.vmem [resolvable:$true] %s39_s10 }
   0x5   :  { %s4139_s11 = scalar_lea.vmem %s40_s10, 8192  ;;  %p4144_p1 = scmp.lt.s32.totalorder %s40_s10, %s40_s10 }
   0x6   :  { %p4140_p0 = scmp.ne.s32.totalorder %s40_s10, %s4139_s11  ;;  %p4145_p2 = scmp.lt.s32.totalorder %s4139_s11, %s4139_s11 }
   0x8   :  { %p4146_p3 = por %p4145_p2, %p4144_p1 }
   0xa   :  { %p4147_p4 = pnand %p4146_p3, %p4140_p0 }
   0xc   :  { %4150 = shalt.err (!%p4147_p4)
}
   0xd   :  { %s4240_s12 = smov 256   ;;  %s4241_s13 = smov 16  }
   0xe   :  { %45 = dma.hbm_to_vmem [thread:$0]  %s4420_s3, 8192, %s40_s10, [#allocation6], %s4240_s12, %s4240_s12, %s4241_s13  }
   0xf   :  { %s4242_s16 = smov [#allocation2]  }
  0x10   :  { %s25_s17 = sshll.u32 %s4242_s16, 4  ;;  %s26_s17 = int_to_ptr.vmem [resolvable:$true] %s25_s17 }
  0x11   :  { %s4159_s18 = scalar_lea.vmem %s26_s17, 2048  ;;  %p4164_p6 = scmp.lt.s32.totalorder %s26_s17, %s26_s17 }
  0x12   :  { %p4160_p5 = scmp.ne.s32.totalorder %s26_s17, %s4159_s18  ;;  %p4165_p7 = scmp.lt.s32.totalorder %s4159_s18, %s4159_s18 }
  0x14   :  { %p4166_p8 = por %p4165_p7, %p4164_p6 }
  0x16   :  { %p4167_p9 = pnand %p4166_p8, %p4160_p5 }
  0x18   :  { %4170 = shalt.err (!%p4167_p9)
}
  0x19   :  { %s4243_s19 = smov 128   ;;  %s4244_s20 = smov 8  }
  0x1a   :  { %31 = dma.hbm_to_vmem [thread:$0]  %s4418_s1, 2048, %s26_s17, [#allocation3], %s4243_s19, %s4243_s19, %s4244_s20  }
  0x1b   :  { %s4245_s3 = smov [#allocation7]  }
  0x1c   :  { %s53_s23 = sshll.u32 %s4245_s3, 4  ;;  %s54_s23 = int_to_ptr.vmem [resolvable:$true] %s53_s23 }
  0x1d   :  { %s4179_s24 = scalar_lea.vmem %s54_s23, 32768  ;;  %p4184_p11 = scmp.lt.s32.totalorder %s54_s23, %s54_s23 }
  0x1e   :  { %p4180_p10 = scmp.ne.s32.totalorder %s54_s23, %s4179_s24  ;;  %p4185_p12 = scmp.lt.s32.totalorder %s4179_s24, %s4179_s24 }
  0x20   :  { %p4186_p13 = por %p4185_p12, %p4184_p11 }
  0x22   :  { %p4187_p0 = pnand %p4186_p13, %p4180_p10 }
  0x24   :  { %4190 = shalt.err (!%p4187_p0)
}
  0x25   :  { %s4246_s25 = smov 512   ;;  %s4247_s26 = smov 32  }
  0x26   :  { %59 = dma.hbm_to_vmem [thread:$0]  %s4422_s5, 32768, %s54_s23, [#allocation6], %s4246_s25, %s4246_s25, %s4247_s26  }
  0x27   :  { %s4248_s29 = smov [#allocation8]  }
  0x28   :  { %s67_s30 = sshll.u32 %s4248_s29, 4  ;;  %s68_s30 = int_to_ptr.vmem [resolvable:$true] %s67_s30 }
  0x29   :  { %s4199_s1 = scalar_lea.vmem %s68_s30, 8192  ;;  %p4204_p2 = scmp.lt.s32.totalorder %s68_s30, %s68_s30 }
  0x2a   :  { %p4200_p1 = scmp.ne.s32.totalorder %s68_s30, %s4199_s1  ;;  %p4205_p3 = scmp.lt.s32.totalorder %s4199_s1, %s4199_s1 }
  0x2c   :  { %p4206_p4 = por %p4205_p3, %p4204_p2 }
  0x2e   :  { %p4207_p5 = pnand %p4206_p4, %p4200_p1 }
  0x30   :  { %4210 = shalt.err (!%p4207_p5)
}
  0x31   :  { %s4249_s10 = smov 64   ;;  %s4250_s11 = smov 4  }
  0x32   :  { %73 = dma.hbm_to_vmem [thread:$0]  %s4424_s7, 8192, %s68_s30, [#allocation9], %s4249_s10, %s4249_s10, %s4250_s11  }
  0x33   :  { %4231 = dma.done.wait [#allocation3], 2048  }
  0x34   :  { %4232 = vsyncadd [#allocation3], 4294965248 }
  0x35   :  { %4233 = dma.done.wait [#allocation6], 40960  }
  0x36   :  { %4234 = vsyncadd [#allocation6], 4294926336 }
  0x37   :  { %4235 = dma.done.wait [#allocation9], 8192  }
  0x38   :  { %4236 = vsyncadd [#allocation9], 4294959104  ;;  %v4251_v0 = vmov 0   ;;  %v3942_v1 = vld [vmem:[#allocation2 + $0x74] ss:$8 sps:$4 sm:$0xff]   ;;  %v3966_v29 = vld [vmem:[%s4417_s0] sm:$0xff]  }
  0x39   :  { %237 = vmatprep.mubr.bf16.mxu0 %v4251_v0  ;;  %v3944_v2 = vld [vmem:[#allocation2 + $0x70] ss:$8 sps:$4 sm:$0xff]   ;;  %205 = vmatprep.subr.bf16.mxu0 %v3942_v1  ;;  %v3945_v3 = vld [vmem:[#allocation2 + $0x64] ss:$8 sps:$4 sm:$0xff]   ;;  %v3947_v4 = vld [vmem:[#allocation2 + $0x60] ss:$8 sps:$4 sm:$0xff]  }
  0x3a   :  { %206 = vmatpush1.bf16.msra.mxu0 %v3944_v2  ;;  %v3948_v5 = vld [vmem:[#allocation2 + $0x54] ss:$8 sps:$4 sm:$0xff]   ;;  %v3950_v6 = vld [vmem:[#allocation2 + $0x50] ss:$8 sps:$4 sm:$0xff]   ;;  %v3951_v7 = vld [vmem:[#allocation2 + $0x44] ss:$8 sps:$4 sm:$0xff]  }
  0x3b   :  { %207 = vmatprep.subr.bf16.mxu0 %v3945_v3  ;;  %v3953_v8 = vld [vmem:[#allocation2 + $0x40] ss:$8 sps:$4 sm:$0xff]   ;;  %v3954_v9 = vld [vmem:[#allocation2 + $0x34] ss:$8 sps:$4 sm:$0xff]   ;;  %v3956_v11 = vld [vmem:[#allocation2 + $0x30] ss:$8 sps:$4 sm:$0xff]  }
  0x3c   :  { %v3967_v10 = vld [vmem:[#allocation5 + $0xe4] ss:$16 sps:$4 sm:$0xff]   ;;  %v3972_v12 = vld [vmem:[#allocation5 + $0xe0] ss:$16 sps:$4 sm:$0xff]   ;;  %v3971_v26 = vld [vmem:[#allocation5 + $0xec] ss:$16 sps:$4 sm:$0xff]  }
  0x3d   :  { %664 = vmatprep.subr.bf16.mxu1 %v3967_v10  ;;  %v3973_v13 = vld [vmem:[#allocation5 + $0xc4] ss:$16 sps:$4 sm:$0xff]   ;;  %v3978_v15 = vld [vmem:[#allocation5 + $0xc0] ss:$16 sps:$4 sm:$0xff]   ;;  %v3969_v30 = vld [vmem:[#allocation5 + $0xe8] ss:$16 sps:$4 sm:$0xff]  }
  0x3e   :  { %208 = vmatpush1.bf16.msra.mxu0 %v3947_v4  ;;  %v3957_v14 = vld [vmem:[#allocation2 + $0x24] ss:$8 sps:$4 sm:$0xff]   ;;  %665 = vmatpush1.bf16.msra.mxu1 %v3972_v12  ;;  %v3959_v17 = vld [vmem:[#allocation2 + $0x20] ss:$8 sps:$4 sm:$0xff]   ;;  %v3960_v18 = vld [vmem:[#allocation2 + $0x14] ss:$8 sps:$4 sm:$0xff]  }
  0x3f   :  { %209 = vmatprep.subr.bf16.mxu0 %v3948_v5  ;;  %666 = vmatprep.subr.bf16.mxu1 %v3973_v13  ;;  %v3979_v16 = vld [vmem:[#allocation5 + $0xa4] ss:$16 sps:$4 sm:$0xff]   ;;  %v3984_v19 = vld [vmem:[#allocation5 + $0xa0] ss:$16 sps:$4 sm:$0xff]   ;;  %v3977_v31 = vld [vmem:[#allocation5 + $0xcc] ss:$16 sps:$4 sm:$0xff]  }
  0x40   :  { %v3985_v20 = vld [vmem:[#allocation5 + $0x84] ss:$16 sps:$4 sm:$0xff]   ;;  %v3962_v21 = vld [vmem:[#allocation2 + $0x10] ss:$8 sps:$4 sm:$0xff]   ;;  %v3965_v25 = vld [vmem:[#allocation2] ss:$8 sps:$4 sm:$0xff]  }
  0x41   :  { %v3963_v22 = vld [vmem:[#allocation2 + $0x4] ss:$8 sps:$4 sm:$0xff]   ;;  %v3990_v23 = vld [vmem:[#allocation5 + $0x80] ss:$16 sps:$4 sm:$0xff]   ;;  %v3975_v34 = vld [vmem:[#allocation5 + $0xc8] ss:$16 sps:$4 sm:$0xff]  }
  0x42   :  { %210 = vmatpush1.bf16.msra.mxu0 %v3950_v6  ;;  %667 = vmatpush1.bf16.msra.mxu1 %v3978_v15  ;;  %v3991_v24 = vld [vmem:[#allocation5 + $0x64] ss:$16 sps:$4 sm:$0xff]   ;;  %v3996_v27 = vld [vmem:[#allocation5 + $0x60] ss:$16 sps:$4 sm:$0xff]   ;;  %v3983_v35 = vld [vmem:[#allocation5 + $0xac] ss:$16 sps:$4 sm:$0xff]  }
  0x43   :  { %211 = vmatprep.subr.bf16.mxu0 %v3951_v7  ;;  %668 = vmatprep.subr.bf16.mxu1 %v3979_v16  ;;  %v3997_v28 = vld [vmem:[#allocation5 + $0x44] ss:$16 sps:$4 sm:$0xff]   ;;  %v4002_v32 = vld [vmem:[#allocation5 + $0x40] ss:$16 sps:$4 sm:$0xff]   ;;  %v3981_v38 = vld [vmem:[#allocation5 + $0xa8] ss:$16 sps:$4 sm:$0xff]  }
  0x44   :  { %v4003_v33 = vld [vmem:[#allocation5 + $0x24] ss:$16 sps:$4 sm:$0xff]   ;;  %v4008_v36 = vld [vmem:[#allocation5 + $0x20] ss:$16 sps:$4 sm:$0xff]   ;;  %v3989_v39 = vld [vmem:[#allocation5 + $0x8c] ss:$16 sps:$4 sm:$0xff]  }
  0x45   :  { %v4009_v37 = vld [vmem:[#allocation5 + $0x4] ss:$16 sps:$4 sm:$0xff]   ;;  %v4014_v40 = vld [vmem:[#allocation5] ss:$16 sps:$4 sm:$0xff]   ;;  %v3987_v42 = vld [vmem:[#allocation5 + $0x88] ss:$16 sps:$4 sm:$0xff]  }
  0x46   :  { %212 = vmatpush1.bf16.msra.mxu0 %v3953_v8  ;;  %669 = vmatpush1.bf16.msra.mxu1 %v3984_v19  ;;  %v4015_v41 = vld [vmem:[#allocation5 + $0x1e4] ss:$16 sps:$4 sm:$0xff]   ;;  %v3995_v43 = vld [vmem:[#allocation5 + $0x6c] ss:$16 sps:$4 sm:$0xff]   ;;  %v4020_v44 = vld [vmem:[#allocation5 + $0x1e0] ss:$16 sps:$4 sm:$0xff]  }
  0x47   :  { %213 = vmatprep.subr.bf16.mxu0 %v3954_v9  ;;  %670 = vmatprep.subr.bf16.mxu1 %v3985_v20  ;;  %v4021_v45 = vld [vmem:[#allocation5 + $0x1c4] ss:$16 sps:$4 sm:$0xff]   ;;  %v3993_v46 = vld [vmem:[#allocation5 + $0x68] ss:$16 sps:$4 sm:$0xff]   ;;  %v4001_v47 = vld [vmem:[#allocation5 + $0x4c] ss:$16 sps:$4 sm:$0xff]  }
  0x48   :  { %v4026_v48 = vld [vmem:[#allocation5 + $0x1c0] ss:$16 sps:$4 sm:$0xff]   ;;  %v4027_v49 = vld [vmem:[#allocation5 + $0x1a4] ss:$16 sps:$4 sm:$0xff]   ;;  %v3999_v50 = vld [vmem:[#allocation5 + $0x48] ss:$16 sps:$4 sm:$0xff]  }
  0x49   :  { %v4007_v51 = vld [vmem:[#allocation5 + $0x2c] ss:$16 sps:$4 sm:$0xff]   ;;  %v4032_v52 = vld [vmem:[#allocation5 + $0x1a0] ss:$16 sps:$4 sm:$0xff]   ;;  %v4033_v53 = vld [vmem:[#allocation5 + $0x184] ss:$16 sps:$4 sm:$0xff]  }
  0x4a   :  { %214 = vmatpush1.bf16.msra.mxu0 %v3956_v11  ;;  %671 = vmatpush1.bf16.msra.mxu1 %v3990_v23  ;;  %v4005_v54 = vld [vmem:[#allocation5 + $0x28] ss:$16 sps:$4 sm:$0xff]   ;;  %v4013_v55 = vld [vmem:[#allocation5 + $0xc] ss:$16 sps:$4 sm:$0xff]   ;;  %v4038_v56 = vld [vmem:[#allocation5 + $0x180] ss:$16 sps:$4 sm:$0xff]  }
  0x4b   :  { %215 = vmatprep.subr.bf16.mxu0 %v3957_v14  ;;  %672 = vmatprep.subr.bf16.mxu1 %v3991_v24  ;;  %v4011_v57 = vld [vmem:[#allocation5 + $0x8] ss:$16 sps:$4 sm:$0xff]   ;;  %v4019_v58 = vld [vmem:[#allocation5 + $0x1ec] ss:$16 sps:$4 sm:$0xff]   ;;  %v4039_v2 = vld [vmem:[#allocation5 + $0x164] ss:$16 sps:$4 sm:$0xff]  }
  0x4c   :  { %v4017_v59 = vld [vmem:[#allocation5 + $0x1e8] ss:$16 sps:$4 sm:$0xff]   ;;  %v4025_v60 = vld [vmem:[#allocation5 + $0x1cc] ss:$16 sps:$4 sm:$0xff]   ;;  %v4044_v5 = vld [vmem:[#allocation5 + $0x160] ss:$16 sps:$4 sm:$0xff]  }
  0x4d   :  { %v4023_v61 = vld [vmem:[#allocation5 + $0x1c8] ss:$16 sps:$4 sm:$0xff]   ;;  %v4031_v62 = vld [vmem:[#allocation5 + $0x1ac] ss:$16 sps:$4 sm:$0xff]   ;;  %v4045_v6 = vld [vmem:[#allocation5 + $0x144] ss:$16 sps:$4 sm:$0xff]  }
  0x4e   :  { %216 = vmatpush1.bf16.msra.mxu0 %v3959_v17  ;;  %673 = vmatpush1.bf16.msra.mxu1 %v3996_v27  ;;  %v4029_v63 = vld [vmem:[#allocation5 + $0x1a8] ss:$16 sps:$4 sm:$0xff]   ;;  %v4037_v0 = vld [vmem:[#allocation5 + $0x18c] ss:$16 sps:$4 sm:$0xff]   ;;  %v4050_v9 = vld [vmem:[#allocation5 + $0x140] ss:$16 sps:$4 sm:$0xff]  }
  0x4f   :  { %217 = vmatprep.subr.bf16.mxu0 %v3960_v18  ;;  %674 = vmatprep.subr.bf16.mxu1 %v3997_v28  ;;  %v4035_v1 = vld [vmem:[#allocation5 + $0x188] ss:$16 sps:$4 sm:$0xff]   ;;  %v4043_v3 = vld [vmem:[#allocation5 + $0x16c] ss:$16 sps:$4 sm:$0xff]   ;;  %v4051_v10 = vld [vmem:[#allocation5 + $0x124] ss:$16 sps:$4 sm:$0xff]  }
  0x50   :  { %v4041_v4 = vld [vmem:[#allocation5 + $0x168] ss:$16 sps:$4 sm:$0xff]   ;;  %v4049_v7 = vld [vmem:[#allocation5 + $0x14c] ss:$16 sps:$4 sm:$0xff]   ;;  %v4056_v13 = vld [vmem:[#allocation5 + $0x120] ss:$16 sps:$4 sm:$0xff]  }
  0x51   :  { %v4047_v8 = vld [vmem:[#allocation5 + $0x148] ss:$16 sps:$4 sm:$0xff]   ;;  %v4055_v11 = vld [vmem:[#allocation5 + $0x12c] ss:$16 sps:$4 sm:$0xff]   ;;  %v4057_v14 = vld [vmem:[#allocation5 + $0x104] ss:$16 sps:$4 sm:$0xff]  }
  0x52   :  { %218 = vmatpush1.bf16.msra.mxu0 %v3962_v21  ;;  %675 = vmatpush1.bf16.msra.mxu1 %v4002_v32  ;;  %v4053_v12 = vld [vmem:[#allocation5 + $0x128] ss:$16 sps:$4 sm:$0xff]   ;;  %v4061_v15 = vld [vmem:[#allocation5 + $0x10c] ss:$16 sps:$4 sm:$0xff]   ;;  %v4062_v17 = vld [vmem:[#allocation5 + $0x100] ss:$16 sps:$4 sm:$0xff]  }
  0x53   :  { %219 = vmatprep.subr.bf16.mxu0 %v3963_v22  ;;  %676 = vmatprep.subr.bf16.mxu1 %v4003_v33  ;;  %v4059_v16 = vld [vmem:[#allocation5 + $0x108] ss:$16 sps:$4 sm:$0xff]   ;;  %v826_v18 = vld [vmem:[#allocation7 + $0x1c0] sm:$0xff] }
  0x54   :  { %v830_v19 = vld [vmem:[#allocation7 + $0x1e0] sm:$0xff] }
  0x55   :  { %v954_v20 = vld [vmem:[#allocation7 + $0x5c0] sm:$0xff]  ;;  %v3575_v21 = vcombine.low %v826_v18, %v830_v19  ;;  %v3576_v22 = vcombine.high %v826_v18, %v830_v19 }
  0x56   :  { %220 = vmatpush1.bf16.msra.mxu0 %v3965_v25  ;;  %677 = vmatpush1.bf16.msra.mxu1 %v4008_v36  ;;  %v958_v23 = vld [vmem:[#allocation7 + $0x5e0] sm:$0xff] }
  0x57   :  { %707 = vmatprep.subr.bf16.mxu0 %v3971_v26  ;;  %678 = vmatprep.subr.bf16.mxu1 %v4009_v37  ;;  %v3703_v24 = vcombine.low %v954_v20, %v958_v23  ;;  %v3704_v25 = vcombine.high %v954_v20, %v958_v23  ;;  %v109_v26 = vlaneseq  ;;  %v790_v18 = vld [vmem:[#allocation7 + $0xa0] sm:$0xff] }
  0x58   :  { %v914_v19 = vld [vmem:[#allocation7 + $0x480] sm:$0xff] }
  0x59   :  { %238 = vmatmul.mubr.bf16.vlgmr.msra.gmra.mxu0 %v3966_v29  ;;  %v4321_v27 = vshrl.u32 %v109_v26, 7  ;;  %v918_v20 = vld [vmem:[#allocation7 + $0x4a0] sm:$0xff] }
  0x5a   :  { %708 = vmatpush1.bf16.msra.mxu0 %v3969_v30  ;;  %679 = vmatpush1.bf16.msra.mxu1 %v4014_v40  ;;  %v107_v30 = vld [vmem:[%s4419_s2] sm:$0x3] }
  0x5b   :  { %709 = vmatprep.subr.bf16.mxu0 %v3977_v31  ;;  %680 = vmatprep.subr.bf16.mxu1 %v4015_v41  ;;  %v4324_v28 = vsub.s32 1, %v4321_v27  ;;  %v4327_v29 = vsub.s32 0, %v4321_v27  ;;  %v782_v26 = vld [vmem:[#allocation7 + $0x60] sm:$0xff] }
  0x5d   :  { %v116_v31 = vrot.slane %v107_v30, %v4324_v28  ;;  %v112_v32 = vrot.slane %v107_v30, %v4327_v29  ;;  %v906_v30 = vld [vmem:[#allocation7 + $0x440] sm:$0xff] }
  0x5e   :  { %710 = vmatpush1.bf16.msra.mxu0 %v3975_v34  ;;  %681 = vmatpush2.bf16.msra.mxu1 %v4020_v44 }
  0x5f   :  { %711 = vmatprep.subr.bf16.mxu0 %v3983_v35  ;;  %682 = vmatprep.subr.bf16.mxu1 %v4021_v45 }
  0x62   :  { %712 = vmatpush1.bf16.msra.mxu0 %v3981_v38  ;;  %683 = vmatpush2.bf16.msra.mxu1 %v4026_v48 }
  0x63   :  { %713 = vmatprep.subr.bf16.mxu0 %v3989_v39  ;;  %684 = vmatprep.subr.bf16.mxu1 %v4027_v49  ;;  %v822_v49 = vld [vmem:[#allocation7 + $0x1a0] sm:$0xff] }
  0x66   :  { %714 = vmatpush1.bf16.msra.mxu0 %v3987_v42  ;;  %685 = vmatpush2.bf16.msra.mxu1 %v4032_v52 }
  0x67   :  { %715 = vmatprep.subr.bf16.mxu0 %v3995_v43  ;;  %686 = vmatprep.subr.bf16.mxu1 %v4033_v53 }
  0x6a   :  { %716 = vmatpush1.bf16.msra.mxu0 %v3993_v46  ;;  %687 = vmatpush2.bf16.msra.mxu1 %v4038_v56  ;;  %v818_v46 = vld [vmem:[#allocation7 + $0x180] sm:$0xff] }
  0x6b   :  { %717 = vmatprep.subr.bf16.mxu0 %v4001_v47  ;;  %688 = vmatprep.subr.bf16.mxu1 %v4039_v2  ;;  %v806_v2 = vld [vmem:[#allocation7 + $0x120] sm:$0xff] }
  0x6e   :  { %718 = vmatpush1.bf16.msra.mxu0 %v3999_v50  ;;  %689 = vmatpush2.bf16.msra.mxu1 %v4044_v5  ;;  %v946_v50 = vld [vmem:[#allocation7 + $0x580] sm:$0xff] }
  0x6f   :  { %719 = vmatprep.subr.bf16.mxu0 %v4007_v51  ;;  %690 = vmatprep.subr.bf16.mxu1 %v4045_v6  ;;  %v950_v51 = vld [vmem:[#allocation7 + $0x5a0] sm:$0xff] }
  0x70   :  { %v3696_v56 = vcombine.high %v946_v50, %v950_v51 }
  0x72   :  { %720 = vmatpush1.bf16.msra.mxu0 %v4005_v54  ;;  %691 = vmatpush2.bf16.msra.mxu1 %v4050_v9  ;;  %v794_v9 = vld [vmem:[#allocation7 + $0xc0] sm:$0xff] }
  0x73   :  { %721 = vmatprep.subr.bf16.mxu0 %v4013_v55  ;;  %692 = vmatprep.subr.bf16.mxu1 %v4051_v10  ;;  %v3568_v55 = vcombine.high %v818_v46, %v822_v49  ;;  %v798_v10 = vld [vmem:[#allocation7 + $0xe0] sm:$0xff] }
  0x76   :  { %722 = vmatpush1.bf16.msra.mxu0 %v4011_v57  ;;  %693 = vmatpush2.bf16.msra.mxu1 %v4056_v13  ;;  %v810_v57 = vld [vmem:[#allocation7 + $0x140] sm:$0xff] }
  0x77   :  { %723 = vmatprep.subr.bf16.mxu0 %v4019_v58  ;;  %694 = vmatprep.subr.bf16.mxu1 %v4057_v14  ;;  %v814_v58 = vld [vmem:[#allocation7 + $0x160] sm:$0xff] }
  0x78   :  { %v3559_v5 = vcombine.low %v810_v57, %v814_v58 }
  0x7a   :  { %724 = vmatpush2.bf16.msra.mxu0 %v4017_v59  ;;  %695 = vmatpush2.bf16.msra.mxu1 %v4062_v17  ;;  %v938_v59 = vld [vmem:[#allocation7 + $0x540] sm:$0xff] }
  0x7b   :  { %725 = vmatprep.subr.bf16.mxu0 %v4025_v60  ;;  %2348 = vmatprep.subr.bf16.mxu1 %v3576_v22  ;;  %v942_v60 = vld [vmem:[#allocation7 + $0x560] sm:$0xff] }
  0x7c   :  { %v3687_v6 = vcombine.low %v938_v59, %v942_v60  ;;  %v786_v17 = vld [vmem:[#allocation7 + $0x80] sm:$0xff] }
  0x7d   :  { %v3536_v23 = vcombine.high %v786_v17, %v790_v18 }
  0x7e   :  { %726 = vmatpush2.bf16.msra.mxu0 %v4023_v61  ;;  %v3567_v61 = vcombine.low %v818_v46, %v822_v49  ;;  %v1018_v46 = vld [vmem:[#allocation7 + $0x7c0] sm:$0xff] }
  0x7f   :  { %727 = vmatprep.subr.bf16.mxu0 %v4031_v62  ;;  %v3695_v62 = vcombine.low %v946_v50, %v950_v51 }
  0x82   :  { %728 = vmatpush2.bf16.msra.mxu0 %v4029_v63  ;;  %v3560_v63 = vcombine.high %v810_v57, %v814_v58 }
  0x83   :  { %729 = vmatprep.subr.bf16.mxu0 %v4037_v0  ;;  %v3688_v0 = vcombine.high %v938_v59, %v942_v60  ;;  %v874_v60 = vld [vmem:[#allocation7 + $0x340] sm:$0xff] }
  0x86   :  { %730 = vmatpush2.bf16.msra.mxu0 %v4035_v1  ;;  %v802_v1 = vld [vmem:[#allocation7 + $0x100] sm:$0xff] }
  0x87   :  { %731 = vmatprep.subr.bf16.mxu0 %v4043_v3  ;;  %v930_v3 = vld [vmem:[#allocation7 + $0x500] sm:$0xff]  ;;  %v3551_v13 = vcombine.low %v802_v1, %v806_v2 }
  0x8a   :  { %732 = vmatpush2.bf16.msra.mxu0 %v4041_v4  ;;  %v934_v4 = vld [vmem:[#allocation7 + $0x520] sm:$0xff] }
  0x8b   :  { %733 = vmatprep.subr.bf16.mxu0 %v4049_v7  ;;  %v3552_v7 = vcombine.high %v802_v1, %v806_v2  ;;  %v3679_v14 = vcombine.low %v930_v3, %v934_v4 }
  0x8e   :  { %734 = vmatpush2.bf16.msra.mxu0 %v4047_v8  ;;  %v3680_v8 = vcombine.high %v930_v3, %v934_v4  ;;  %v866_v4 = vld [vmem:[#allocation7 + $0x300] sm:$0xff] }
  0x8f   :  { %735 = vmatprep.subr.bf16.mxu0 %v4055_v11  ;;  %v922_v11 = vld [vmem:[#allocation7 + $0x4c0] sm:$0xff] }
  0x92   :  { %736 = vmatpush2.bf16.msra.mxu0 %v4053_v12  ;;  %v926_v12 = vld [vmem:[#allocation7 + $0x4e0] sm:$0xff] }
  0x93   :  { %737 = vmatprep.subr.bf16.mxu0 %v4061_v15  ;;  %v3544_v15 = vcombine.high %v794_v9, %v798_v10  ;;  %v3671_v22 = vcombine.low %v922_v11, %v926_v12 }
  0x96   :  { %738 = vmatpush2.bf16.msra.mxu0 %v4059_v16  ;;  %v3672_v16 = vcombine.high %v922_v11, %v926_v12  ;;  %v858_v12 = vld [vmem:[#allocation7 + $0x2c0] sm:$0xff] }
  0x97   :  { %2391 = vmatprep.subr.bf16.mxu0 %v3704_v25  ;;  %v778_v25 = vld [vmem:[#allocation7 + $0x40] sm:$0xff] }
 0x119   :  { %v239_v33 = vpop.f32.mrf.mxu0 }
 0x11a   :  { %v240_v36 = vadd.f32 %v239_v33, %v112_v32  ;;  %v3663_v33 = vcombine.low %v914_v19, %v918_v20 }
 0x11b   :  { %v241_v34 = vpop.f32.mrf.mxu0 }
 0x11c   :  { %v242_v35 = vadd.f32 %v241_v34, %v116_v31  ;;  %v248_v43 = vmul.f32 0.2, %v240_v36  ;;  %v3528_v34 = vcombine.high %v778_v25, %v782_v26 }
 0x11d   :  { %v243_v37 = vpop.f32.mrf.mxu0 }
 0x11e   :  { %v244_v38 = vadd.f32 %v243_v37, %v112_v32  ;;  %v249_v40 = vmul.f32 0.2, %v242_v35  ;;  %v252_v52 = vmax.f32 %v240_v36, %v248_v43  ;;  %v3535_v32 = vcombine.low %v786_v17, %v790_v18  ;;  %v770_v36 = vld [vmem:[#allocation7] sm:$0xff] }
 0x11f   :  { %v245_v39 = vpop.f32.mrf.mxu0  ;;  %v774_v37 = vld [vmem:[#allocation7 + $0x20] sm:$0xff] }
 0x120   :  { %v250_v41 = vmul.f32 0.2, %v244_v38  ;;  %v246_v42 = vadd.f32 %v245_v39, %v116_v31  ;;  %v253_v47 = vmax.f32 %v242_v35, %v249_v40  ;;  %v910_v31 = vld [vmem:[#allocation7 + $0x460] sm:$0xff]  ;;  %v3527_v40 = vcombine.low %v778_v25, %v782_v26 }
 0x121   :  { %v3656_v35 = vcombine.high %v906_v30, %v910_v31  ;;  %v902_v39 = vld [vmem:[#allocation7 + $0x420] sm:$0xff] }
 0x122   :  { %v251_v44 = vmul.f32 0.2, %v246_v42  ;;  %v254_v45 = vmax.f32 %v244_v38, %v250_v41  ;;  %v898_v38 = vld [vmem:[#allocation7 + $0x400] sm:$0xff]  ;;  %v3655_v41 = vcombine.low %v906_v30, %v910_v31 }
 0x123   :  { %v3648_v43 = vcombine.high %v898_v38, %v902_v39  ;;  %v3647_v49 = vcombine.low %v898_v38, %v902_v39  ;;  %v982_v26 = vld [vmem:[#allocation7 + $0x6a0] sm:$0xff] }
 0x124   :  { %v255_v48 = vmax.f32 %v246_v42, %v251_v44  ;;  %v256_v54 = vpack.c.bf16 %v254_v45, %v252_v52  ;;  %v3520_v42 = vcombine.high %v770_v36, %v774_v37  ;;  %v890_v44 = vld [vmem:[#allocation7 + $0x3c0] sm:$0xff] }
 0x125   :  { %v894_v45 = vld [vmem:[#allocation7 + $0x3e0] sm:$0xff] }
 0x126   :  { %v257_v53 = vpack.c.bf16 %v255_v48, %v253_v47  ;;  %v1022_v47 = vld [vmem:[#allocation7 + $0x7e0] sm:$0xff]  ;;  %v3519_v48 = vcombine.low %v770_v36, %v774_v37  ;;  %v3640_v50 = vcombine.high %v890_v44, %v894_v45 }
 0x127   :  { %v3768_v51 = vcombine.high %v1018_v46, %v1022_v47  ;;  %v882_v52 = vld [vmem:[#allocation7 + $0x380] sm:$0xff]  ;;  %v3767_v57 = vcombine.low %v1018_v46, %v1022_v47 }
 0x128   :  { %696 = vmatprep.mubr.bf16.mxu1 %v257_v53  ;;  %739 = vmatprep.mubr.bf16.mxu0 %v257_v53  ;;  %v886_v53 = vld [vmem:[#allocation7 + $0x3a0] sm:$0xff] }
 0x129   :  { %697 = vmatmul.mubr.bf16.vlgmr.msra.gmra.mxu1 %v256_v54  ;;  %740 = vmatmul.mubr.bf16.vlgmr.msra.gmra.mxu0 %v256_v54  ;;  %v1010_v54 = vld [vmem:[#allocation7 + $0x780] sm:$0xff]  ;;  %v3632_v58 = vcombine.high %v882_v52, %v886_v53 }
 0x12a   :  { %2349 = vmatpush1.bf16.msra.mxu1 %v3575_v21  ;;  %2392 = vmatpush1.bf16.msra.mxu0 %v3703_v24  ;;  %v3543_v21 = vcombine.low %v794_v9, %v798_v10  ;;  %v3664_v24 = vcombine.high %v914_v19, %v918_v20  ;;  %v974_v37 = vld [vmem:[#allocation7 + $0x660] sm:$0xff] }
 0x12b   :  { %2350 = vmatprep.subr.bf16.mxu1 %v3568_v55  ;;  %2393 = vmatprep.subr.bf16.mxu0 %v3696_v56  ;;  %v1014_v55 = vld [vmem:[#allocation7 + $0x7a0] sm:$0xff]  ;;  %v3639_v56 = vcombine.low %v890_v44, %v894_v45 }
 0x12c   :  { %v3760_v59 = vcombine.high %v1010_v54, %v1014_v55  ;;  %v3759_v1 = vcombine.low %v1010_v54, %v1014_v55  ;;  %v966_v45 = vld [vmem:[#allocation7 + $0x620] sm:$0xff] }
 0x12e   :  { %2351 = vmatpush1.bf16.msra.mxu1 %v3567_v61  ;;  %2394 = vmatpush1.bf16.msra.mxu0 %v3695_v62  ;;  %v878_v61 = vld [vmem:[#allocation7 + $0x360] sm:$0xff] }
 0x12f   :  { %2352 = vmatprep.subr.bf16.mxu1 %v3560_v63  ;;  %2395 = vmatprep.subr.bf16.mxu0 %v3688_v0  ;;  %v1002_v62 = vld [vmem:[#allocation7 + $0x740] sm:$0xff]  ;;  %v3631_v0 = vcombine.low %v882_v52, %v886_v53  ;;  %v3624_v2 = vcombine.high %v874_v60, %v878_v61  ;;  %v4342_v53 = vld [vmem:[#allocation7 + $0x5e8] sm:$0xff] }
 0x130   :  { %v1006_v63 = vld [vmem:[#allocation7 + $0x760] sm:$0xff] }
 0x131   :  { %v3752_v3 = vcombine.high %v1002_v62, %v1006_v63  ;;  %v3751_v9 = vcombine.low %v1002_v62, %v1006_v63 }
 0x132   :  { %2353 = vmatpush1.bf16.msra.mxu1 %v3559_v5  ;;  %2396 = vmatpush1.bf16.msra.mxu0 %v3687_v6  ;;  %v870_v5 = vld [vmem:[#allocation7 + $0x320] sm:$0xff] }
 0x133   :  { %2354 = vmatprep.subr.bf16.mxu1 %v3552_v7  ;;  %2397 = vmatprep.subr.bf16.mxu0 %v3680_v8  ;;  %v994_v6 = vld [vmem:[#allocation7 + $0x700] sm:$0xff]  ;;  %v3623_v8 = vcombine.low %v874_v60, %v878_v61  ;;  %v3616_v10 = vcombine.high %v866_v4, %v870_v5 }
 0x134   :  { %v998_v7 = vld [vmem:[#allocation7 + $0x720] sm:$0xff] }
 0x135   :  { %v3744_v11 = vcombine.high %v994_v6, %v998_v7  ;;  %v3743_v17 = vcombine.low %v994_v6, %v998_v7 }
 0x136   :  { %2355 = vmatpush1.bf16.msra.mxu1 %v3551_v13  ;;  %2398 = vmatpush1.bf16.msra.mxu0 %v3679_v14  ;;  %v862_v13 = vld [vmem:[#allocation7 + $0x2e0] sm:$0xff] }
 0x137   :  { %2356 = vmatprep.subr.bf16.mxu1 %v3544_v15  ;;  %2399 = vmatprep.subr.bf16.mxu0 %v3672_v16  ;;  %v986_v14 = vld [vmem:[#allocation7 + $0x6c0] sm:$0xff]  ;;  %v3615_v16 = vcombine.low %v866_v4, %v870_v5  ;;  %v3608_v18 = vcombine.high %v858_v12, %v862_v13  ;;  %v3607_v20 = vcombine.low %v858_v12, %v862_v13 }
 0x138   :  { %v990_v15 = vld [vmem:[#allocation7 + $0x6e0] sm:$0xff] }
 0x139   :  { %v3736_v19 = vcombine.high %v986_v14, %v990_v15 }
 0x13a   :  { %2357 = vmatpush1.bf16.msra.mxu1 %v3543_v21  ;;  %2400 = vmatpush1.bf16.msra.mxu0 %v3671_v22  ;;  %v3735_v21 = vcombine.low %v986_v14, %v990_v15  ;;  %v850_v22 = vld [vmem:[#allocation7 + $0x280] sm:$0xff] }
 0x13b   :  { %2358 = vmatprep.subr.bf16.mxu1 %v3536_v23  ;;  %2401 = vmatprep.subr.bf16.mxu0 %v3664_v24  ;;  %v854_v23 = vld [vmem:[#allocation7 + $0x2a0] sm:$0xff] }
 0x13c   :  { %v978_v24 = vld [vmem:[#allocation7 + $0x680] sm:$0xff]  ;;  %v3600_v25 = vcombine.high %v850_v22, %v854_v23  ;;  %v3599_v30 = vcombine.low %v850_v22, %v854_v23 }
 0x13d   :  { %v3727_v31 = vcombine.low %v978_v24, %v982_v26 }
 0x13e   :  { %2359 = vmatpush1.bf16.msra.mxu1 %v3535_v32  ;;  %2402 = vmatpush1.bf16.msra.mxu0 %v3663_v33  ;;  %v3728_v32 = vcombine.high %v978_v24, %v982_v26  ;;  %v842_v33 = vld [vmem:[#allocation7 + $0x240] sm:$0xff] }
 0x13f   :  { %2360 = vmatprep.subr.bf16.mxu1 %v3528_v34  ;;  %2403 = vmatprep.subr.bf16.mxu0 %v3656_v35  ;;  %v846_v34 = vld [vmem:[#allocation7 + $0x260] sm:$0xff] }
 0x140   :  { %v970_v35 = vld [vmem:[#allocation7 + $0x640] sm:$0xff]  ;;  %v3592_v36 = vcombine.high %v842_v33, %v846_v34  ;;  %v3591_v38 = vcombine.low %v842_v33, %v846_v34  ;;  %v819_v33 = vld [vmem:[#allocation7 + $0x188] sm:$0xff] }
 0x141   :  { %v3719_v39 = vcombine.low %v970_v35, %v974_v37 }
 0x142   :  { %2361 = vmatpush1.bf16.msra.mxu1 %v3527_v40  ;;  %2404 = vmatpush1.bf16.msra.mxu0 %v3655_v41  ;;  %v3720_v40 = vcombine.high %v970_v35, %v974_v37  ;;  %v834_v41 = vld [vmem:[#allocation7 + $0x200] sm:$0xff]  ;;  %v947_v37 = vld [vmem:[#allocation7 + $0x588] sm:$0xff] }
 0x143   :  { %2362 = vmatprep.subr.bf16.mxu1 %v3520_v42  ;;  %2405 = vmatprep.subr.bf16.mxu0 %v3648_v43  ;;  %v838_v42 = vld [vmem:[#allocation7 + $0x220] sm:$0xff] }
 0x144   :  { %v962_v43 = vld [vmem:[#allocation7 + $0x600] sm:$0xff]  ;;  %v3584_v44 = vcombine.high %v834_v41, %v838_v42  ;;  %v3583_v46 = vcombine.low %v834_v41, %v838_v42 }
 0x145   :  { %v3711_v47 = vcombine.low %v962_v43, %v966_v45 }
 0x146   :  { %2363 = vmatpush1.bf16.msra.mxu1 %v3519_v48  ;;  %2406 = vmatpush1.bf16.msra.mxu0 %v3647_v49  ;;  %v3712_v48 = vcombine.high %v962_v43, %v966_v45  ;;  %v4334_v49 = vld [vmem:[#allocation7 + $0x1c8] sm:$0xff] }
 0x147   :  { %2364 = vmatprep.subr.bf16.mxu1 %v3640_v50  ;;  %2407 = vmatprep.subr.bf16.mxu0 %v3768_v51  ;;  %v4336_v50 = vld [vmem:[#allocation7 + $0x1e8] sm:$0xff] }
 0x148   :  { %v4338_v51 = vld [vmem:[#allocation7 + $0x5c8] sm:$0xff]  ;;  %v3578_v52 = vcombine.high %v4334_v49, %v4336_v50  ;;  %v3577_v54 = vcombine.low %v4334_v49, %v4336_v50 }
 0x149   :  { %v3705_v55 = vcombine.low %v4338_v51, %v4342_v53  ;;  %v811_v43 = vld [vmem:[#allocation7 + $0x148] sm:$0xff] }
 0x14a   :  { %2365 = vmatpush2.bf16.msra.mxu1 %v3639_v56  ;;  %2408 = vmatpush2.bf16.msra.mxu0 %v3767_v57  ;;  %v3706_v56 = vcombine.high %v4338_v51, %v4342_v53  ;;  %v322_v57 = vld [vmem:[%s4421_s4] sm:$0xf]  ;;  %v803_v53 = vld [vmem:[#allocation7 + $0x108] sm:$0xff] }
 0x14b   :  { %2366 = vmatprep.subr.bf16.mxu1 %v3632_v58  ;;  %2409 = vmatprep.subr.bf16.mxu0 %v3760_v59  ;;  %v338_v58 = vsub.s32 3, %v4321_v27  ;;  %v334_v59 = vsub.s32 2, %v4321_v27  ;;  %v327_v60 = vrot.slane %v322_v57, %v4327_v29  ;;  %v331_v61 = vrot.slane %v322_v57, %v4324_v28 }
 0x14d   :  { %v339_v62 = vrot.slane %v322_v57, %v338_v58 }
 0x14e   :  { %2367 = vmatpush2.bf16.msra.mxu1 %v3631_v0  ;;  %2410 = vmatpush2.bf16.msra.mxu0 %v3759_v1  ;;  %v335_v0 = vrot.slane %v322_v57, %v334_v59  ;;  %v931_v57 = vld [vmem:[#allocation7 + $0x508] sm:$0xff] }
 0x14f   :  { %2368 = vmatprep.subr.bf16.mxu1 %v3624_v2  ;;  %2411 = vmatprep.subr.bf16.mxu0 %v3752_v3 }
 0x152   :  { %2369 = vmatpush2.bf16.msra.mxu1 %v3623_v8  ;;  %2412 = vmatpush2.bf16.msra.mxu0 %v3751_v9 }
 0x153   :  { %2370 = vmatprep.subr.bf16.mxu1 %v3616_v10  ;;  %2413 = vmatprep.subr.bf16.mxu0 %v3744_v11 }
 0x156   :  { %2371 = vmatpush2.bf16.msra.mxu1 %v3615_v16  ;;  %2414 = vmatpush2.bf16.msra.mxu0 %v3743_v17 }
 0x157   :  { %2372 = vmatprep.subr.bf16.mxu1 %v3608_v18  ;;  %2415 = vmatprep.subr.bf16.mxu0 %v3736_v19 }
 0x15a   :  { %2373 = vmatpush2.bf16.msra.mxu1 %v3607_v20  ;;  %2416 = vmatpush2.bf16.msra.mxu0 %v3735_v21 }
 0x15b   :  { %2374 = vmatprep.subr.bf16.mxu1 %v3600_v25  ;;  %2417 = vmatprep.subr.bf16.mxu0 %v3728_v32 }
 0x15e   :  { %2375 = vmatpush2.bf16.msra.mxu1 %v3599_v30  ;;  %2418 = vmatpush2.bf16.msra.mxu0 %v3727_v31 }
 0x15f   :  { %2376 = vmatprep.subr.bf16.mxu1 %v3592_v36  ;;  %2419 = vmatprep.subr.bf16.mxu0 %v3720_v40  ;;  %v823_v36 = vld [vmem:[#allocation7 + $0x1a8] sm:$0xff] }
 0x160   :  { %v3569_v49 = vcombine.low %v819_v33, %v823_v36 }
 0x162   :  { %2377 = vmatpush2.bf16.msra.mxu1 %v3591_v38  ;;  %2420 = vmatpush2.bf16.msra.mxu0 %v3719_v39  ;;  %v951_v38 = vld [vmem:[#allocation7 + $0x5a8] sm:$0xff] }
 0x163   :  { %2378 = vmatprep.subr.bf16.mxu1 %v3584_v44  ;;  %2421 = vmatprep.subr.bf16.mxu0 %v3712_v48  ;;  %v3570_v44 = vcombine.high %v819_v33, %v823_v36  ;;  %v3698_v45 = vcombine.high %v947_v37, %v951_v38  ;;  %v943_v48 = vld [vmem:[#allocation7 + $0x568] sm:$0xff]  ;;  %v3697_v50 = vcombine.low %v947_v37, %v951_v38 }
 0x164   :  { %v1019_v36 = vld [vmem:[#allocation7 + $0x7c8] sm:$0xff] }
 0x165   :  { %v1023_v37 = vld [vmem:[#allocation7 + $0x7e8] sm:$0xff] }
 0x166   :  { %2379 = vmatpush2.bf16.msra.mxu1 %v3583_v46  ;;  %2422 = vmatpush2.bf16.msra.mxu0 %v3711_v47  ;;  %v815_v46 = vld [vmem:[#allocation7 + $0x168] sm:$0xff] }
 0x167   :  { %2434 = vmatprep.subr.bf16.mxu1 %v3578_v52  ;;  %2477 = vmatprep.subr.bf16.mxu0 %v3706_v56  ;;  %v939_v47 = vld [vmem:[#allocation7 + $0x548] sm:$0xff]  ;;  %v3562_v51 = vcombine.high %v811_v43, %v815_v46 }
 0x168   :  { %v3690_v52 = vcombine.high %v939_v47, %v943_v48  ;;  %v807_v56 = vld [vmem:[#allocation7 + $0x128] sm:$0xff] }
 0x1e9   :  { %v698_v63 = vpop.f32.mrf.mxu1  ;;  %v741_v1 = vpop.f32.mrf.mxu0 }
 0x1ea   :  { %v699_v2 = vadd.f32 %v698_v63, %v327_v60  ;;  %v742_v7 = vadd.f32 %v741_v1, %v335_v0  ;;  %v795_v63 = vld [vmem:[#allocation7 + $0xc8] sm:$0xff] }
 0x1eb   :  { %v700_v3 = vpop.f32.mrf.mxu1  ;;  %v743_v4 = vpop.f32.mrf.mxu0  ;;  %v923_v1 = vld [vmem:[#allocation7 + $0x4c8] sm:$0xff] }
 0x1ec   :  { %v701_v5 = vadd.f32 %v700_v3, %v331_v61  ;;  %v744_v6 = vadd.f32 %v743_v4, %v339_v62  ;;  %v750_v10 = vmul.f32 0.2, %v699_v2  ;;  %v752_v19 = vmul.f32 0.2, %v742_v7 }
 0x1ed   :  { %v702_v8 = vpop.f32.mrf.mxu1  ;;  %v745_v9 = vpop.f32.mrf.mxu0  ;;  %v3553_v3 = vcombine.low %v803_v53, %v807_v56 }
 0x1ee   :  { %v703_v11 = vadd.f32 %v702_v8, %v327_v60  ;;  %v746_v12 = vadd.f32 %v745_v9, %v335_v0  ;;  %v751_v15 = vmul.f32 0.2, %v701_v5  ;;  %v753_v16 = vmul.f32 0.2, %v744_v6  ;;  %v935_v60 = vld [vmem:[#allocation7 + $0x528] sm:$0xff] }
 0x1ef   :  { %v704_v13 = vpop.f32.mrf.mxu1  ;;  %v747_v14 = vpop.f32.mrf.mxu0  ;;  %v758_v34 = vmax.f32 %v699_v2, %v750_v10  ;;  %v760_v35 = vmax.f32 %v742_v7, %v752_v19  ;;  %v799_v0 = vld [vmem:[#allocation7 + $0xe8] sm:$0xff]  ;;  %v3681_v4 = vcombine.low %v931_v57, %v935_v60 }
 0x1f0   :  { %v705_v17 = vadd.f32 %v704_v13, %v331_v61  ;;  %v748_v18 = vadd.f32 %v747_v14, %v339_v62  ;;  %v754_v20 = vmul.f32 0.2, %v703_v11  ;;  %v756_v21 = vmul.f32 0.2, %v746_v12  ;;  %v927_v2 = vld [vmem:[#allocation7 + $0x4e8] sm:$0xff] }
 0x1f1   :  { %v759_v26 = vmax.f32 %v701_v5, %v751_v15  ;;  %v761_v30 = vmax.f32 %v744_v6, %v753_v16  ;;  %v3561_v61 = vcombine.low %v811_v43, %v815_v46  ;;  %v3689_v62 = vcombine.low %v939_v47, %v943_v48  ;;  %v787_v7 = vld [vmem:[#allocation7 + $0x88] sm:$0xff] }
 0x1f2   :  { %v755_v22 = vmul.f32 0.2, %v705_v17  ;;  %v757_v23 = vmul.f32 0.2, %v748_v18  ;;  %v762_v24 = vmax.f32 %v703_v11, %v754_v20  ;;  %v764_v25 = vmax.f32 %v746_v12, %v756_v21  ;;  %v791_v8 = vld [vmem:[#allocation7 + $0xa8] sm:$0xff] }
 0x1f3   :  { %v3546_v5 = vcombine.high %v795_v63, %v799_v0  ;;  %v3674_v6 = vcombine.high %v923_v1, %v927_v2  ;;  %v915_v9 = vld [vmem:[#allocation7 + $0x488] sm:$0xff]  ;;  %v3545_v11 = vcombine.low %v795_v63, %v799_v0  ;;  %v3673_v12 = vcombine.low %v923_v1, %v927_v2 }
 0x1f4   :  { %v763_v31 = vmax.f32 %v705_v17, %v755_v22  ;;  %v765_v32 = vmax.f32 %v748_v18, %v757_v23  ;;  %v4365_v41 = vpack.c.bf16 %v762_v24, %v758_v34  ;;  %v4367_v42 = vpack.c.bf16 %v764_v25, %v760_v35  ;;  %v919_v10 = vld [vmem:[#allocation7 + $0x4a8] sm:$0xff] }
 0x1f5   :  { %v3538_v13 = vcombine.high %v787_v7, %v791_v8  ;;  %v3666_v14 = vcombine.high %v915_v9, %v919_v10  ;;  %v779_v15 = vld [vmem:[#allocation7 + $0x48] sm:$0xff]  ;;  %v3537_v19 = vcombine.low %v787_v7, %v791_v8  ;;  %v3665_v20 = vcombine.low %v915_v9, %v919_v10 }
 0x1f6   :  { %v4361_v39 = vpack.c.bf16 %v763_v31, %v759_v26  ;;  %v4363_v40 = vpack.c.bf16 %v765_v32, %v761_v30  ;;  %v783_v16 = vld [vmem:[#allocation7 + $0x68] sm:$0xff] }
 0x1f7   :  { %v907_v17 = vld [vmem:[#allocation7 + $0x448] sm:$0xff]  ;;  %v3530_v21 = vcombine.high %v779_v15, %v783_v16  ;;  %v3529_v30 = vcombine.low %v779_v15, %v783_v16 }
 0x1f8   :  { %2380 = vmatprep.mubr.bf16.mxu1 %v4361_v39  ;;  %2423 = vmatprep.mubr.bf16.mxu0 %v4363_v40  ;;  %v911_v18 = vld [vmem:[#allocation7 + $0x468] sm:$0xff] }
 0x1f9   :  { %2381 = vmatmul.mubr.bf16.vlgmr.msra.gmra.mxu1 %v4365_v41  ;;  %2424 = vmatmul.mubr.bf16.vlgmr.msra.gmra.mxu0 %v4367_v42  ;;  %v3658_v22 = vcombine.high %v907_v17, %v911_v18  ;;  %v771_v23 = vld [vmem:[#allocation7 + $0x8] sm:$0xff]  ;;  %v3657_v31 = vcombine.low %v907_v17, %v911_v18 }
 0x1fa   :  { %2435 = vmatpush1.bf16.msra.mxu1 %v3577_v54  ;;  %2478 = vmatpush1.bf16.msra.mxu0 %v3705_v55  ;;  %v3554_v54 = vcombine.high %v803_v53, %v807_v56  ;;  %v3682_v55 = vcombine.high %v931_v57, %v935_v60  ;;  %v775_v24 = vld [vmem:[#allocation7 + $0x28] sm:$0xff] }
 0x1fb   :  { %2466 = vmatprep.mubr.bf16.mxu1 %v4361_v39  ;;  %2509 = vmatprep.mubr.bf16.mxu0 %v4363_v40  ;;  %v899_v25 = vld [vmem:[#allocation7 + $0x408] sm:$0xff]  ;;  %v3522_v32 = vcombine.high %v771_v23, %v775_v24  ;;  %v3521_v38 = vcombine.low %v771_v23, %v775_v24 }
 0x1fc   :  { %2436 = vmatprep.subr.bf16.mxu1 %v3570_v44  ;;  %2479 = vmatprep.subr.bf16.mxu0 %v3698_v45  ;;  %v903_v26 = vld [vmem:[#allocation7 + $0x428] sm:$0xff]  ;;  %v3770_v45 = vcombine.high %v1019_v36, %v1023_v37 }
 0x1fd   :  { %v3650_v33 = vcombine.high %v899_v25, %v903_v26  ;;  %v891_v34 = vld [vmem:[#allocation7 + $0x3c8] sm:$0xff]  ;;  %v3649_v43 = vcombine.low %v899_v25, %v903_v26 }
 0x1fe   :  { %2437 = vmatpush1.bf16.msra.mxu1 %v3569_v49  ;;  %2480 = vmatpush1.bf16.msra.mxu0 %v3697_v50  ;;  %v895_v35 = vld [vmem:[#allocation7 + $0x3e8] sm:$0xff] }
 0x1ff   :  { %2438 = vmatprep.subr.bf16.mxu1 %v3562_v51  ;;  %2481 = vmatprep.subr.bf16.mxu0 %v3690_v52  ;;  %v3642_v44 = vcombine.high %v891_v34, %v895_v35  ;;  %v883_v46 = vld [vmem:[#allocation7 + $0x388] sm:$0xff]  ;;  %v3641_v50 = vcombine.low %v891_v34, %v895_v35  ;;  %v3769_v51 = vcombine.low %v1019_v36, %v1023_v37 }
 0x200   :  { %v887_v47 = vld [vmem:[#allocation7 + $0x3a8] sm:$0xff] }
 0x201   :  { %v1011_v48 = vld [vmem:[#allocation7 + $0x788] sm:$0xff]  ;;  %v3634_v52 = vcombine.high %v883_v46, %v887_v47 }
 0x202   :  { %2439 = vmatpush1.bf16.msra.mxu1 %v3561_v61  ;;  %2482 = vmatpush1.bf16.msra.mxu0 %v3689_v62  ;;  %v1015_v49 = vld [vmem:[#allocation7 + $0x7a8] sm:$0xff]  ;;  %v3633_v62 = vcombine.low %v883_v46, %v887_v47  ;;  %v828_v47 = vld [vmem:[#allocation7 + $0x1d0] sm:$0xff] }
 0x203   :  { %2440 = vmatprep.subr.bf16.mxu1 %v3554_v54  ;;  %2483 = vmatprep.subr.bf16.mxu0 %v3682_v55  ;;  %v3762_v53 = vcombine.high %v1011_v48, %v1015_v49  ;;  %v875_v56 = vld [vmem:[#allocation7 + $0x348] sm:$0xff]  ;;  %v3761_v54 = vcombine.low %v1011_v48, %v1015_v49  ;;  %v832_v48 = vld [vmem:[#allocation7 + $0x1f0] sm:$0xff] }
 0x204   :  { %v879_v57 = vld [vmem:[#allocation7 + $0x368] sm:$0xff]  ;;  %v956_v49 = vld [vmem:[#allocation7 + $0x5d0] sm:$0xff] }
 0x205   :  { %v1003_v60 = vld [vmem:[#allocation7 + $0x748] sm:$0xff]  ;;  %v3626_v55 = vcombine.high %v875_v56, %v879_v57 }
 0x206   :  { %2441 = vmatpush1.bf16.msra.mxu1 %v3553_v3  ;;  %2484 = vmatpush1.bf16.msra.mxu0 %v3681_v4  ;;  %v1007_v61 = vld [vmem:[#allocation7 + $0x768] sm:$0xff]  ;;  %v3625_v4 = vcombine.low %v875_v56, %v879_v57  ;;  %v820_v57 = vld [vmem:[#allocation7 + $0x190] sm:$0xff] }
 0x207   :  { %2442 = vmatprep.subr.bf16.mxu1 %v3546_v5  ;;  %2485 = vmatprep.subr.bf16.mxu0 %v3674_v6  ;;  %v3754_v63 = vcombine.high %v1003_v60, %v1007_v61  ;;  %v867_v0 = vld [vmem:[#allocation7 + $0x308] sm:$0xff]  ;;  %v3753_v5 = vcombine.low %v1003_v60, %v1007_v61  ;;  %v824_v60 = vld [vmem:[#allocation7 + $0x1b0] sm:$0xff] }
 0x208   :  { %v871_v1 = vld [vmem:[#allocation7 + $0x328] sm:$0xff]  ;;  %v948_v61 = vld [vmem:[#allocation7 + $0x590] sm:$0xff] }
 0x209   :  { %v995_v2 = vld [vmem:[#allocation7 + $0x708] sm:$0xff]  ;;  %v3618_v6 = vcombine.high %v867_v0, %v871_v1 }
 0x20a   :  { %2443 = vmatpush1.bf16.msra.mxu1 %v3545_v11  ;;  %2486 = vmatpush1.bf16.msra.mxu0 %v3673_v12  ;;  %v999_v3 = vld [vmem:[#allocation7 + $0x728] sm:$0xff]  ;;  %v3617_v12 = vcombine.low %v867_v0, %v871_v1  ;;  %v812_v1 = vld [vmem:[#allocation7 + $0x150] sm:$0xff] }
 0x20b   :  { %2444 = vmatprep.subr.bf16.mxu1 %v3538_v13  ;;  %2487 = vmatprep.subr.bf16.mxu0 %v3666_v14  ;;  %v3746_v7 = vcombine.high %v995_v2, %v999_v3  ;;  %v859_v8 = vld [vmem:[#allocation7 + $0x2c8] sm:$0xff]  ;;  %v3745_v13 = vcombine.low %v995_v2, %v999_v3  ;;  %v816_v2 = vld [vmem:[#allocation7 + $0x170] sm:$0xff] }
 0x20c   :  { %v863_v9 = vld [vmem:[#allocation7 + $0x2e8] sm:$0xff]  ;;  %v940_v3 = vld [vmem:[#allocation7 + $0x550] sm:$0xff] }
 0x20d   :  { %v987_v10 = vld [vmem:[#allocation7 + $0x6c8] sm:$0xff]  ;;  %v3610_v14 = vcombine.high %v859_v8, %v863_v9 }
 0x20e   :  { %2445 = vmatpush1.bf16.msra.mxu1 %v3537_v19  ;;  %2488 = vmatpush1.bf16.msra.mxu0 %v3665_v20  ;;  %v991_v11 = vld [vmem:[#allocation7 + $0x6e8] sm:$0xff]  ;;  %v3609_v20 = vcombine.low %v859_v8, %v863_v9  ;;  %v804_v9 = vld [vmem:[#allocation7 + $0x110] sm:$0xff] }
 0x20f   :  { %2446 = vmatprep.subr.bf16.mxu1 %v3530_v21  ;;  %2489 = vmatprep.subr.bf16.mxu0 %v3658_v22  ;;  %v3738_v15 = vcombine.high %v987_v10, %v991_v11  ;;  %v851_v16 = vld [vmem:[#allocation7 + $0x288] sm:$0xff]  ;;  %v3737_v21 = vcombine.low %v987_v10, %v991_v11  ;;  %v808_v10 = vld [vmem:[#allocation7 + $0x130] sm:$0xff] }
 0x210   :  { %v855_v17 = vld [vmem:[#allocation7 + $0x2a8] sm:$0xff]  ;;  %v932_v11 = vld [vmem:[#allocation7 + $0x510] sm:$0xff] }
 0x211   :  { %v979_v18 = vld [vmem:[#allocation7 + $0x688] sm:$0xff]  ;;  %v3602_v22 = vcombine.high %v851_v16, %v855_v17 }
 0x212   :  { %2447 = vmatpush1.bf16.msra.mxu1 %v3529_v30  ;;  %2490 = vmatpush1.bf16.msra.mxu0 %v3657_v31  ;;  %v983_v19 = vld [vmem:[#allocation7 + $0x6a8] sm:$0xff]  ;;  %v3601_v31 = vcombine.low %v851_v16, %v855_v17  ;;  %v796_v17 = vld [vmem:[#allocation7 + $0xd0] sm:$0xff] }
 0x213   :  { %2448 = vmatprep.subr.bf16.mxu1 %v3522_v32  ;;  %2491 = vmatprep.subr.bf16.mxu0 %v3650_v33  ;;  %v3730_v23 = vcombine.high %v979_v18, %v983_v19  ;;  %v843_v24 = vld [vmem:[#allocation7 + $0x248] sm:$0xff]  ;;  %v3729_v32 = vcombine.low %v979_v18, %v983_v19  ;;  %v800_v18 = vld [vmem:[#allocation7 + $0xf0] sm:$0xff] }
 0x214   :  { %v847_v25 = vld [vmem:[#allocation7 + $0x268] sm:$0xff]  ;;  %v924_v19 = vld [vmem:[#allocation7 + $0x4d0] sm:$0xff] }
 0x215   :  { %v971_v26 = vld [vmem:[#allocation7 + $0x648] sm:$0xff]  ;;  %v3594_v33 = vcombine.high %v843_v24, %v847_v25 }
 0x216   :  { %2449 = vmatpush1.bf16.msra.mxu1 %v3521_v38  ;;  %2492 = vmatpush1.bf16.msra.mxu0 %v3649_v43  ;;  %v975_v30 = vld [vmem:[#allocation7 + $0x668] sm:$0xff]  ;;  %v3593_v43 = vcombine.low %v843_v24, %v847_v25  ;;  %v788_v25 = vld [vmem:[#allocation7 + $0x90] sm:$0xff] }
 0x217   :  { %2450 = vmatprep.subr.bf16.mxu1 %v3642_v44  ;;  %2493 = vmatprep.subr.bf16.mxu0 %v3770_v45  ;;  %v3722_v34 = vcombine.high %v971_v26, %v975_v30  ;;  %v835_v35 = vld [vmem:[#allocation7 + $0x208] sm:$0xff]  ;;  %v3721_v44 = vcombine.low %v971_v26, %v975_v30  ;;  %v792_v26 = vld [vmem:[#allocation7 + $0xb0] sm:$0xff] }
 0x218   :  { %v839_v36 = vld [vmem:[#allocation7 + $0x228] sm:$0xff]  ;;  %v916_v30 = vld [vmem:[#allocation7 + $0x490] sm:$0xff] }
 0x219   :  { %v963_v37 = vld [vmem:[#allocation7 + $0x608] sm:$0xff]  ;;  %v3586_v45 = vcombine.high %v835_v35, %v839_v36 }
 0x21a   :  { %2451 = vmatpush2.bf16.msra.mxu1 %v3641_v50  ;;  %2494 = vmatpush2.bf16.msra.mxu0 %v3769_v51  ;;  %v967_v38 = vld [vmem:[#allocation7 + $0x628] sm:$0xff]  ;;  %v960_v50 = vld [vmem:[#allocation7 + $0x5f0] sm:$0xff]  ;;  %v3585_v51 = vcombine.low %v835_v35, %v839_v36 }
 0x21b   :  { %2452 = vmatprep.subr.bf16.mxu1 %v3634_v52  ;;  %2495 = vmatprep.subr.bf16.mxu0 %v3762_v53  ;;  %v3714_v46 = vcombine.high %v963_v37, %v967_v38  ;;  %v3713_v52 = vcombine.low %v963_v37, %v967_v38  ;;  %v3580_v53 = vcombine.high %v828_v47, %v832_v48  ;;  %v780_v36 = vld [vmem:[#allocation7 + $0x50] sm:$0xff] }
 0x21c   :  { %v3708_v56 = vcombine.high %v956_v49, %v960_v50  ;;  %v784_v37 = vld [vmem:[#allocation7 + $0x70] sm:$0xff] }
 0x21d   :  { %v908_v38 = vld [vmem:[#allocation7 + $0x450] sm:$0xff] }
 0x21e   :  { %2453 = vmatpush2.bf16.msra.mxu1 %v3633_v62  ;;  %2496 = vmatpush2.bf16.msra.mxu0 %v3761_v54  ;;  %v952_v62 = vld [vmem:[#allocation7 + $0x5b0] sm:$0xff]  ;;  %v3579_v54 = vcombine.low %v828_v47, %v832_v48 }
 0x21f   :  { %2454 = vmatprep.subr.bf16.mxu1 %v3626_v55  ;;  %2497 = vmatprep.subr.bf16.mxu0 %v3754_v63  ;;  %v3707_v55 = vcombine.low %v956_v49, %v960_v50  ;;  %v3572_v63 = vcombine.high %v820_v57, %v824_v60  ;;  %v3700_v0 = vcombine.high %v948_v61, %v952_v62  ;;  %v772_v48 = vld [vmem:[#allocation7 + $0x10] sm:$0xff] }
 0x220   :  { %v776_v49 = vld [vmem:[#allocation7 + $0x30] sm:$0xff] }
 0x221   :  { %v900_v50 = vld [vmem:[#allocation7 + $0x410] sm:$0xff] }
 0x222   :  { %2455 = vmatpush2.bf16.msra.mxu1 %v3625_v4  ;;  %2498 = vmatpush2.bf16.msra.mxu0 %v3753_v5  ;;  %v944_v4 = vld [vmem:[#allocation7 + $0x570] sm:$0xff]  ;;  %v3571_v5 = vcombine.low %v820_v57, %v824_v60 }
 0x223   :  { %2456 = vmatprep.subr.bf16.mxu1 %v3618_v6  ;;  %2499 = vmatprep.subr.bf16.mxu0 %v3746_v7  ;;  %v3699_v6 = vcombine.low %v948_v61, %v952_v62  ;;  %v3564_v7 = vcombine.high %v812_v1, %v816_v2  ;;  %v3692_v8 = vcombine.high %v940_v3, %v944_v4  ;;  %v892_v60 = vld [vmem:[#allocation7 + $0x3d0] sm:$0xff] }
 0x224   :  { %v896_v61 = vld [vmem:[#allocation7 + $0x3f0] sm:$0xff] }
 0x225   :  { %v1020_v62 = vld [vmem:[#allocation7 + $0x7d0] sm:$0xff] }
 0x226   :  { %2457 = vmatpush2.bf16.msra.mxu1 %v3617_v12  ;;  %2500 = vmatpush2.bf16.msra.mxu0 %v3745_v13  ;;  %v936_v12 = vld [vmem:[#allocation7 + $0x530] sm:$0xff]  ;;  %v3563_v13 = vcombine.low %v812_v1, %v816_v2 }
 0x227   :  { %2458 = vmatprep.subr.bf16.mxu1 %v3610_v14  ;;  %2501 = vmatprep.subr.bf16.mxu0 %v3738_v15  ;;  %v3691_v14 = vcombine.low %v940_v3, %v944_v4  ;;  %v3556_v15 = vcombine.high %v804_v9, %v808_v10  ;;  %v3684_v16 = vcombine.high %v932_v11, %v936_v12  ;;  %v884_v2 = vld [vmem:[#allocation7 + $0x390] sm:$0xff] }
 0x228   :  { %v888_v3 = vld [vmem:[#allocation7 + $0x3b0] sm:$0xff] }
 0x229   :  { %v1012_v4 = vld [vmem:[#allocation7 + $0x790] sm:$0xff] }
 0x22a   :  { %2459 = vmatpush2.bf16.msra.mxu1 %v3609_v20  ;;  %2502 = vmatpush2.bf16.msra.mxu0 %v3737_v21  ;;  %v928_v20 = vld [vmem:[#allocation7 + $0x4f0] sm:$0xff]  ;;  %v3555_v21 = vcombine.low %v804_v9, %v808_v10 }
 0x22b   :  { %2460 = vmatprep.subr.bf16.mxu1 %v3602_v22  ;;  %2503 = vmatprep.subr.bf16.mxu0 %v3730_v23  ;;  %v3683_v22 = vcombine.low %v932_v11, %v936_v12  ;;  %v3548_v23 = vcombine.high %v796_v17, %v800_v18  ;;  %v3676_v24 = vcombine.high %v924_v19, %v928_v20  ;;  %v876_v10 = vld [vmem:[#allocation7 + $0x350] sm:$0xff] }
 0x22c   :  { %v880_v11 = vld [vmem:[#allocation7 + $0x370] sm:$0xff] }
 0x22d   :  { %v1004_v12 = vld [vmem:[#allocation7 + $0x750] sm:$0xff] }
 0x22e   :  { %2461 = vmatpush2.bf16.msra.mxu1 %v3601_v31  ;;  %2504 = vmatpush2.bf16.msra.mxu0 %v3729_v32  ;;  %v920_v31 = vld [vmem:[#allocation7 + $0x4b0] sm:$0xff]  ;;  %v3547_v32 = vcombine.low %v796_v17, %v800_v18 }
 0x22f   :  { %2462 = vmatprep.subr.bf16.mxu1 %v3594_v33  ;;  %2505 = vmatprep.subr.bf16.mxu0 %v3722_v34  ;;  %v3675_v33 = vcombine.low %v924_v19, %v928_v20  ;;  %v3540_v34 = vcombine.high %v788_v25, %v792_v26  ;;  %v3668_v35 = vcombine.high %v916_v30, %v920_v31  ;;  %v868_v18 = vld [vmem:[#allocation7 + $0x310] sm:$0xff] }
 0x230   :  { %v872_v19 = vld [vmem:[#allocation7 + $0x330] sm:$0xff] }
 0x231   :  { %v996_v20 = vld [vmem:[#allocation7 + $0x710] sm:$0xff] }
 0x232   :  { %2463 = vmatpush2.bf16.msra.mxu1 %v3593_v43  ;;  %2506 = vmatpush2.bf16.msra.mxu0 %v3721_v44  ;;  %v912_v43 = vld [vmem:[#allocation7 + $0x470] sm:$0xff]  ;;  %v3539_v44 = vcombine.low %v788_v25, %v792_v26 }
 0x233   :  { %2464 = vmatprep.subr.bf16.mxu1 %v3586_v45  ;;  %2507 = vmatprep.subr.bf16.mxu0 %v3714_v46  ;;  %v3667_v45 = vcombine.low %v916_v30, %v920_v31  ;;  %v3532_v46 = vcombine.high %v780_v36, %v784_v37  ;;  %v3660_v47 = vcombine.high %v908_v38, %v912_v43  ;;  %v860_v26 = vld [vmem:[#allocation7 + $0x2d0] sm:$0xff] }
 0x234   :  { %v864_v30 = vld [vmem:[#allocation7 + $0x2f0] sm:$0xff] }
 0x235   :  { %v988_v31 = vld [vmem:[#allocation7 + $0x6d0] sm:$0xff] }
 0x236   :  { %2465 = vmatpush2.bf16.msra.mxu1 %v3585_v51  ;;  %2508 = vmatpush2.bf16.msra.mxu0 %v3713_v52  ;;  %v904_v51 = vld [vmem:[#allocation7 + $0x430] sm:$0xff]  ;;  %v3531_v52 = vcombine.low %v780_v36, %v784_v37 }
 0x237   :  { %2520 = vmatprep.subr.bf16.mxu1 %v3580_v53  ;;  %2563 = vmatprep.subr.bf16.mxu0 %v3708_v56  ;;  %v3659_v53 = vcombine.low %v908_v38, %v912_v43  ;;  %v3524_v56 = vcombine.high %v772_v48, %v776_v49  ;;  %v3652_v57 = vcombine.high %v900_v50, %v904_v51  ;;  %v852_v37 = vld [vmem:[#allocation7 + $0x290] sm:$0xff] }
 0x238   :  { %v856_v38 = vld [vmem:[#allocation7 + $0x2b0] sm:$0xff] }
 0x239   :  { %2467 = vmatmul.mubr.bf16.vlgmr.msra.gmra.mxu1 %v4365_v41  ;;  %2510 = vmatmul.mubr.bf16.vlgmr.msra.gmra.mxu0 %v4367_v42  ;;  %v980_v43 = vld [vmem:[#allocation7 + $0x690] sm:$0xff] }
 0x23a   :  { %2521 = vmatpush1.bf16.msra.mxu1 %v3579_v54  ;;  %2552 = vmatprep.mubr.bf16.mxu1 %v4361_v39  ;;  %v1024_v54 = vld [vmem:[#allocation7 + $0x7f0] sm:$0xff] }
 0x23b   :  { %2564 = vmatpush1.bf16.msra.mxu0 %v3707_v55  ;;  %2595 = vmatprep.mubr.bf16.mxu0 %v4363_v40  ;;  %v3523_v55 = vcombine.low %v772_v48, %v776_v49  ;;  %v3772_v1 = vcombine.high %v1020_v62, %v1024_v54  ;;  %v844_v49 = vld [vmem:[#allocation7 + $0x250] sm:$0xff] }
 0x23c   :  { %2522 = vmatprep.subr.bf16.mxu1 %v3572_v63  ;;  %2565 = vmatprep.subr.bf16.mxu0 %v3700_v0  ;;  %v3651_v63 = vcombine.low %v900_v50, %v904_v51  ;;  %v3644_v0 = vcombine.high %v892_v60, %v896_v61  ;;  %v848_v50 = vld [vmem:[#allocation7 + $0x270] sm:$0xff] }
 0x23d   :  { %v972_v51 = vld [vmem:[#allocation7 + $0x650] sm:$0xff] }
 0x23e   :  { %2523 = vmatpush1.bf16.msra.mxu1 %v3571_v5  ;;  %v1016_v5 = vld [vmem:[#allocation7 + $0x7b0] sm:$0xff] }
 0x23f   :  { %2566 = vmatpush1.bf16.msra.mxu0 %v3699_v6  ;;  %2524 = vmatprep.subr.bf16.mxu1 %v3564_v7  ;;  %v3643_v6 = vcombine.low %v892_v60, %v896_v61  ;;  %v3771_v7 = vcombine.low %v1020_v62, %v1024_v54  ;;  %v3764_v9 = vcombine.high %v1012_v4, %v1016_v5  ;;  %v836_v61 = vld [vmem:[#allocation7 + $0x210] sm:$0xff] }
 0x240   :  { %2567 = vmatprep.subr.bf16.mxu0 %v3692_v8  ;;  %v3636_v8 = vcombine.high %v884_v2, %v888_v3  ;;  %v840_v62 = vld [vmem:[#allocation7 + $0x230] sm:$0xff] }
 0x241   :  { %v964_v54 = vld [vmem:[#allocation7 + $0x610] sm:$0xff] }
 0x242   :  { %2525 = vmatpush1.bf16.msra.mxu1 %v3563_v13  ;;  %v1008_v13 = vld [vmem:[#allocation7 + $0x770] sm:$0xff] }
 0x243   :  { %2568 = vmatpush1.bf16.msra.mxu0 %v3691_v14  ;;  %2526 = vmatprep.subr.bf16.mxu1 %v3556_v15  ;;  %v3635_v14 = vcombine.low %v884_v2, %v888_v3  ;;  %v3763_v15 = vcombine.low %v1012_v4, %v1016_v5  ;;  %v3756_v17 = vcombine.high %v1004_v12, %v1008_v13  ;;  %v829_v3 = vld [vmem:[#allocation7 + $0x1d8] sm:$0xff] }
 0x244   :  { %2569 = vmatprep.subr.bf16.mxu0 %v3684_v16  ;;  %v3628_v16 = vcombine.high %v876_v10, %v880_v11  ;;  %v833_v4 = vld [vmem:[#allocation7 + $0x1f8] sm:$0xff] }
 0x245   :  { %v957_v5 = vld [vmem:[#allocation7 + $0x5d8] sm:$0xff] }
 0x246   :  { %2527 = vmatpush1.bf16.msra.mxu1 %v3555_v21  ;;  %v1000_v21 = vld [vmem:[#allocation7 + $0x730] sm:$0xff] }
 0x247   :  { %2570 = vmatpush1.bf16.msra.mxu0 %v3683_v22  ;;  %2528 = vmatprep.subr.bf16.mxu1 %v3548_v23  ;;  %v3627_v22 = vcombine.low %v876_v10, %v880_v11  ;;  %v3755_v23 = vcombine.low %v1004_v12, %v1008_v13  ;;  %v3748_v25 = vcombine.high %v996_v20, %v1000_v21  ;;  %v821_v11 = vld [vmem:[#allocation7 + $0x198] sm:$0xff] }
 0x248   :  { %2571 = vmatprep.subr.bf16.mxu0 %v3676_v24  ;;  %v3620_v24 = vcombine.high %v868_v18, %v872_v19  ;;  %v825_v12 = vld [vmem:[#allocation7 + $0x1b8] sm:$0xff]  ;;  %v3581_v13 = vcombine.low %v829_v3, %v833_v4 }
 0x24a   :  { %2529 = vmatpush1.bf16.msra.mxu1 %v3547_v32  ;;  %v992_v32 = vld [vmem:[#allocation7 + $0x6f0] sm:$0xff] }
 0x24b   :  { %2572 = vmatpush1.bf16.msra.mxu0 %v3675_v33  ;;  %2530 = vmatprep.subr.bf16.mxu1 %v3540_v34  ;;  %v3619_v33 = vcombine.low %v868_v18, %v872_v19  ;;  %v3747_v34 = vcombine.low %v996_v20, %v1000_v21  ;;  %v3740_v36 = vcombine.high %v988_v31, %v992_v32  ;;  %v813_v18 = vld [vmem:[#allocation7 + $0x158] sm:$0xff] }
 0x24c   :  { %2573 = vmatprep.subr.bf16.mxu0 %v3668_v35  ;;  %v3612_v35 = vcombine.high %v860_v26, %v864_v30  ;;  %v817_v19 = vld [vmem:[#allocation7 + $0x178] sm:$0xff] }
 0x24d   :  { %v941_v21 = vld [vmem:[#allocation7 + $0x558] sm:$0xff] }
 0x24e   :  { %2531 = vmatpush1.bf16.msra.mxu1 %v3539_v44  ;;  %v984_v44 = vld [vmem:[#allocation7 + $0x6b0] sm:$0xff] }
 0x24f   :  { %2574 = vmatpush1.bf16.msra.mxu0 %v3667_v45  ;;  %2532 = vmatprep.subr.bf16.mxu1 %v3532_v46  ;;  %v3611_v45 = vcombine.low %v860_v26, %v864_v30  ;;  %v3739_v46 = vcombine.low %v988_v31, %v992_v32  ;;  %v3732_v48 = vcombine.high %v980_v43, %v984_v44  ;;  %v805_v30 = vld [vmem:[#allocation7 + $0x118] sm:$0xff] }
 0x250   :  { %2575 = vmatprep.subr.bf16.mxu0 %v3660_v47  ;;  %v3604_v47 = vcombine.high %v852_v37, %v856_v38  ;;  %v809_v31 = vld [vmem:[#allocation7 + $0x138] sm:$0xff] }
 0x251   :  { %v933_v32 = vld [vmem:[#allocation7 + $0x518] sm:$0xff] }
 0x252   :  { %2533 = vmatpush1.bf16.msra.mxu1 %v3531_v52  ;;  %v976_v52 = vld [vmem:[#allocation7 + $0x670] sm:$0xff] }
 0x253   :  { %2576 = vmatpush1.bf16.msra.mxu0 %v3659_v53  ;;  %2534 = vmatprep.subr.bf16.mxu1 %v3524_v56  ;;  %v3603_v53 = vcombine.low %v852_v37, %v856_v38  ;;  %v3731_v56 = vcombine.low %v980_v43, %v984_v44  ;;  %v3724_v60 = vcombine.high %v972_v51, %v976_v52  ;;  %v797_v37 = vld [vmem:[#allocation7 + $0xd8] sm:$0xff] }
 0x254   :  { %2577 = vmatprep.subr.bf16.mxu0 %v3652_v57  ;;  %v3596_v57 = vcombine.high %v844_v49, %v848_v50  ;;  %v801_v38 = vld [vmem:[#allocation7 + $0xf8] sm:$0xff] }
 0x255   :  { %v925_v43 = vld [vmem:[#allocation7 + $0x4d8] sm:$0xff] }
 0x256   :  { %2535 = vmatpush1.bf16.msra.mxu1 %v3523_v55  ;;  %v968_v55 = vld [vmem:[#allocation7 + $0x630] sm:$0xff]  ;;  %v929_v44 = vld [vmem:[#allocation7 + $0x4f8] sm:$0xff] }
 0x257   :  { %2578 = vmatpush1.bf16.msra.mxu0 %v3651_v63  ;;  %2536 = vmatprep.subr.bf16.mxu1 %v3644_v0  ;;  %v3595_v63 = vcombine.low %v844_v49, %v848_v50  ;;  %v3723_v0 = vcombine.low %v972_v51, %v976_v52  ;;  %v3716_v2 = vcombine.high %v964_v54, %v968_v55  ;;  %v793_v49 = vld [vmem:[#allocation7 + $0xb8] sm:$0xff] }
 0x258   :  { %2579 = vmatprep.subr.bf16.mxu0 %v3772_v1  ;;  %v3588_v1 = vcombine.high %v836_v61, %v840_v62  ;;  %v917_v50 = vld [vmem:[#allocation7 + $0x498] sm:$0xff]  ;;  %v3549_v52 = vcombine.low %v797_v37, %v801_v38 }
 0x259   :  { %v921_v51 = vld [vmem:[#allocation7 + $0x4b8] sm:$0xff] }
 0x25a   :  { %2537 = vmatpush2.bf16.msra.mxu1 %v3643_v6  ;;  %v961_v6 = vld [vmem:[#allocation7 + $0x5f8] sm:$0xff] }
 0x25b   :  { %2580 = vmatpush2.bf16.msra.mxu0 %v3771_v7  ;;  %2538 = vmatprep.subr.bf16.mxu1 %v3636_v8  ;;  %v3587_v7 = vcombine.low %v836_v61, %v840_v62  ;;  %v3715_v8 = vcombine.low %v964_v54, %v968_v55  ;;  %v3710_v10 = vcombine.high %v957_v5, %v961_v6  ;;  %v785_v61 = vld [vmem:[#allocation7 + $0x78] sm:$0xff] }
 0x25c   :  { %2581 = vmatprep.subr.bf16.mxu0 %v3764_v9  ;;  %v3582_v9 = vcombine.high %v829_v3, %v833_v4  ;;  %v909_v62 = vld [vmem:[#allocation7 + $0x458] sm:$0xff] }
 0x25d   :  { %v913_v54 = vld [vmem:[#allocation7 + $0x478] sm:$0xff] }
 0x25e   :  { %2539 = vmatpush2.bf16.msra.mxu1 %v3635_v14  ;;  %v949_v14 = vld [vmem:[#allocation7 + $0x598] sm:$0xff] }
 0x25f   :  { %2582 = vmatpush2.bf16.msra.mxu0 %v3763_v15  ;;  %2540 = vmatprep.subr.bf16.mxu1 %v3628_v16  ;;  %v953_v15 = vld [vmem:[#allocation7 + $0x5b8] sm:$0xff]  ;;  %v3709_v16 = vcombine.low %v957_v5, %v961_v6 }
 0x260   :  { %2583 = vmatprep.subr.bf16.mxu0 %v3756_v17  ;;  %v3574_v17 = vcombine.high %v821_v11, %v825_v12  ;;  %v3702_v20 = vcombine.high %v949_v14, %v953_v15  ;;  %v777_v3 = vld [vmem:[#allocation7 + $0x38] sm:$0xff] }
 0x261   :  { %v901_v4 = vld [vmem:[#allocation7 + $0x418] sm:$0xff] }
 0x262   :  { %2541 = vmatpush2.bf16.msra.mxu1 %v3627_v22  ;;  %v945_v22 = vld [vmem:[#allocation7 + $0x578] sm:$0xff] }
 0x263   :  { %2584 = vmatpush2.bf16.msra.mxu0 %v3755_v23  ;;  %2542 = vmatprep.subr.bf16.mxu1 %v3620_v24  ;;  %v3573_v23 = vcombine.low %v821_v11, %v825_v12  ;;  %v3701_v24 = vcombine.low %v949_v14, %v953_v15  ;;  %v3694_v26 = vcombine.high %v941_v21, %v945_v22  ;;  %v905_v5 = vld [vmem:[#allocation7 + $0x438] sm:$0xff] }
 0x264   :  { %2585 = vmatprep.subr.bf16.mxu0 %v3748_v25  ;;  %v3566_v25 = vcombine.high %v813_v18, %v817_v19  ;;  %v897_v11 = vld [vmem:[#allocation7 + $0x3f8] sm:$0xff]  ;;  %v3653_v15 = vcombine.low %v901_v4, %v905_v5 }
 0x265   :  { %v1021_v12 = vld [vmem:[#allocation7 + $0x7d8] sm:$0xff] }
 0x266   :  { %2543 = vmatpush2.bf16.msra.mxu1 %v3619_v33  ;;  %v937_v33 = vld [vmem:[#allocation7 + $0x538] sm:$0xff] }
 0x267   :  { %2586 = vmatpush2.bf16.msra.mxu0 %v3747_v34  ;;  %2544 = vmatprep.subr.bf16.mxu1 %v3612_v35  ;;  %v3565_v34 = vcombine.low %v813_v18, %v817_v19  ;;  %v3693_v35 = vcombine.low %v941_v21, %v945_v22  ;;  %v885_v18 = vld [vmem:[#allocation7 + $0x398] sm:$0xff] }
 0x268   :  { %2587 = vmatprep.subr.bf16.mxu0 %v3740_v36  ;;  %v3558_v36 = vcombine.high %v805_v30, %v809_v31  ;;  %v889_v19 = vld [vmem:[#allocation7 + $0x3b8] sm:$0xff] }
 0x269   :  { %v1017_v21 = vld [vmem:[#allocation7 + $0x7b8] sm:$0xff] }
 0x26a   :  { %2545 = vmatpush2.bf16.msra.mxu1 %v3611_v45  ;;  %v3685_v45 = vcombine.low %v933_v32, %v937_v33 }
 0x26b   :  { %2588 = vmatpush2.bf16.msra.mxu0 %v3739_v46  ;;  %2546 = vmatprep.subr.bf16.mxu1 %v3604_v47  ;;  %v3550_v46 = vcombine.high %v797_v37, %v801_v38  ;;  %v3678_v47 = vcombine.high %v925_v43, %v929_v44  ;;  %v873_v37 = vld [vmem:[#allocation7 + $0x338] sm:$0xff] }
 0x26c   :  { %2589 = vmatprep.subr.bf16.mxu0 %v3732_v48  ;;  %v789_v48 = vld [vmem:[#allocation7 + $0x98] sm:$0xff] }
 0x26d   :  { %v3541_v55 = vcombine.low %v789_v48, %v793_v49  ;;  %v997_v38 = vld [vmem:[#allocation7 + $0x718] sm:$0xff] }
 0x26e   :  { %2547 = vmatpush2.bf16.msra.mxu1 %v3603_v53  ;;  %v3677_v53 = vcombine.low %v925_v43, %v929_v44  ;;  %v1001_v43 = vld [vmem:[#allocation7 + $0x738] sm:$0xff] }
 0x26f   :  { %2590 = vmatpush2.bf16.msra.mxu0 %v3731_v56  ;;  %2548 = vmatprep.subr.bf16.mxu1 %v3596_v57  ;;  %v3542_v56 = vcombine.high %v789_v48, %v793_v49  ;;  %v3670_v57 = vcombine.high %v917_v50, %v921_v51  ;;  %v865_v48 = vld [vmem:[#allocation7 + $0x2f8] sm:$0xff] }
 0x270   :  { %2591 = vmatprep.subr.bf16.mxu0 %v3724_v60  ;;  %v781_v60 = vld [vmem:[#allocation7 + $0x58] sm:$0xff] }
 0x271   :  { %v3533_v6 = vcombine.low %v781_v60, %v785_v61  ;;  %v989_v49 = vld [vmem:[#allocation7 + $0x6d8] sm:$0xff] }
 0x272   :  { %2549 = vmatpush2.bf16.msra.mxu1 %v3595_v63  ;;  %v3669_v63 = vcombine.low %v917_v50, %v921_v51  ;;  %v993_v50 = vld [vmem:[#allocation7 + $0x6f8] sm:$0xff] }
 0x273   :  { %2592 = vmatpush2.bf16.msra.mxu0 %v3723_v0  ;;  %2550 = vmatprep.subr.bf16.mxu1 %v3588_v1  ;;  %v3534_v0 = vcombine.high %v781_v60, %v785_v61  ;;  %v3662_v1 = vcombine.high %v909_v62, %v913_v54  ;;  %v857_v60 = vld [vmem:[#allocation7 + $0x2b8] sm:$0xff] }
 0x274   :  { %2593 = vmatprep.subr.bf16.mxu0 %v3716_v2  ;;  %v773_v2 = vld [vmem:[#allocation7 + $0x18] sm:$0xff] }
 0x275   :  { %v3525_v14 = vcombine.low %v773_v2, %v777_v3  ;;  %v981_v61 = vld [vmem:[#allocation7 + $0x698] sm:$0xff] }
 0x276   :  { %2551 = vmatpush2.bf16.msra.mxu1 %v3587_v7  ;;  %v3661_v7 = vcombine.low %v909_v62, %v913_v54  ;;  %v985_v62 = vld [vmem:[#allocation7 + $0x6b8] sm:$0xff] }
 0x277   :  { %2594 = vmatpush2.bf16.msra.mxu0 %v3715_v8  ;;  %2606 = vmatprep.subr.bf16.mxu1 %v3582_v9  ;;  %v3526_v8 = vcombine.high %v773_v2, %v777_v3  ;;  %v3654_v9 = vcombine.high %v901_v4, %v905_v5  ;;  %v849_v2 = vld [vmem:[#allocation7 + $0x278] sm:$0xff] }
 0x278   :  { %2649 = vmatprep.subr.bf16.mxu0 %v3710_v10  ;;  %v893_v10 = vld [vmem:[#allocation7 + $0x3d8] sm:$0xff] }
 0x279   :  { %2553 = vmatmul.mubr.bf16.vlgmr.msra.gmra.mxu1 %v4365_v41  ;;  %v3645_v22 = vcombine.low %v893_v10, %v897_v11  ;;  %v973_v3 = vld [vmem:[#allocation7 + $0x658] sm:$0xff] }
 0x27a   :  { %2596 = vmatmul.mubr.bf16.vlgmr.msra.gmra.mxu0 %v4367_v42  ;;  %2607 = vmatpush1.bf16.msra.mxu1 %v3581_v13  ;;  %v1025_v13 = vld [vmem:[#allocation7 + $0x7f8] sm:$0xff] }
 0x27b   :  { %2638 = vmatprep.mubr.bf16.mxu1 %v4361_v39  ;;  %2650 = vmatpush1.bf16.msra.mxu0 %v3709_v16  ;;  %v3686_v39 = vcombine.high %v933_v32, %v937_v33  ;;  %v3646_v16 = vcombine.high %v893_v10, %v897_v11  ;;  %v1009_v32 = vld [vmem:[#allocation7 + $0x778] sm:$0xff]  ;;  %v3637_v33 = vcombine.low %v885_v18, %v889_v19 }
 0x27c   :  { %2681 = vmatprep.mubr.bf16.mxu0 %v4363_v40  ;;  %2608 = vmatprep.subr.bf16.mxu1 %v3574_v17  ;;  %v3557_v40 = vcombine.low %v805_v30, %v809_v31  ;;  %v3774_v17 = vcombine.high %v1021_v12, %v1025_v13  ;;  %v881_v30 = vld [vmem:[#allocation7 + $0x378] sm:$0xff] }
 0x27d   :  { %2651 = vmatprep.subr.bf16.mxu0 %v3702_v20  ;;  %v1013_v20 = vld [vmem:[#allocation7 + $0x798] sm:$0xff] }
 0x27e   :  { %2609 = vmatpush1.bf16.msra.mxu1 %v3573_v23  ;;  %v3773_v23 = vcombine.low %v1021_v12, %v1025_v13  ;;  %v1005_v31 = vld [vmem:[#allocation7 + $0x758] sm:$0xff] }
 0x27f   :  { %2652 = vmatpush1.bf16.msra.mxu0 %v3701_v24  ;;  %2610 = vmatprep.subr.bf16.mxu1 %v3566_v25  ;;  %v3638_v24 = vcombine.high %v885_v18, %v889_v19  ;;  %v3766_v25 = vcombine.high %v1013_v20, %v1017_v21  ;;  %v977_v4 = vld [vmem:[#allocation7 + $0x678] sm:$0xff] }
 0x280   :  { %2653 = vmatprep.subr.bf16.mxu0 %v3694_v26  ;;  %v877_v26 = vld [vmem:[#allocation7 + $0x358] sm:$0xff] }
 0x281   :  { %v3629_v44 = vcombine.low %v877_v26, %v881_v30  ;;  %v841_v10 = vld [vmem:[#allocation7 + $0x238] sm:$0xff] }
 0x282   :  { %2611 = vmatpush1.bf16.msra.mxu1 %v3565_v34  ;;  %v3765_v34 = vcombine.low %v1013_v20, %v1017_v21  ;;  %v965_v11 = vld [vmem:[#allocation7 + $0x618] sm:$0xff] }
 0x283   :  { %2654 = vmatpush1.bf16.msra.mxu0 %v3693_v35  ;;  %2612 = vmatprep.subr.bf16.mxu1 %v3558_v36  ;;  %v3630_v35 = vcombine.high %v877_v26, %v881_v30  ;;  %v3758_v36 = vcombine.high %v1005_v31, %v1009_v32  ;;  %v969_v12 = vld [vmem:[#allocation7 + $0x638] sm:$0xff]  ;;  %v4081_v26 = vld [vmem:[#allocation8 + $0xf0] sm:$0xff]  }
 0x284   :  { %2655 = vmatprep.subr.bf16.mxu0 %v3686_v39  ;;  %v869_v39 = vld [vmem:[#allocation7 + $0x318] sm:$0xff]  ;;  %v3717_v18 = vcombine.low %v965_v11, %v969_v12 }
 0x285   :  { %v3621_v51 = vcombine.low %v869_v39, %v873_v37  ;;  %v4063_v19 = vld [vmem:[#allocation8 + $0x78] sm:$0xff]  }
 0x286   :  { %2613 = vmatpush1.bf16.msra.mxu1 %v3557_v40  ;;  %v3757_v40 = vcombine.low %v1005_v31, %v1009_v32  ;;  %v4079_v20 = vld [vmem:[#allocation8 + $0xf8] sm:$0xff]   ;;  %v4066_v32 = vld [vmem:[#allocation8 + $0x30] sm:$0xff]  }
 0x287   :  { %2656 = vmatpush1.bf16.msra.mxu0 %v3685_v45  ;;  %2614 = vmatprep.subr.bf16.mxu1 %v3550_v46  ;;  %v3622_v45 = vcombine.high %v869_v39, %v873_v37  ;;  %v3750_v46 = vcombine.high %v997_v38, %v1001_v43  ;;  %v4064_v21 = vld [vmem:[#allocation8 + $0x38] sm:$0xff]   ;;  %v4083_v37 = vld [vmem:[#allocation8 + $0xe8] sm:$0xff]  }
 0x288   :  { %2657 = vmatprep.subr.bf16.mxu0 %v3678_v47  ;;  %v861_v47 = vld [vmem:[#allocation7 + $0x2d8] sm:$0xff] }
 0x289   :  { %v3613_v54 = vcombine.low %v861_v47, %v865_v48 }
 0x28a   :  { %2615 = vmatpush1.bf16.msra.mxu1 %v3549_v52  ;;  %v3749_v52 = vcombine.low %v997_v38, %v1001_v43 }
 0x28b   :  { %2658 = vmatpush1.bf16.msra.mxu0 %v3677_v53  ;;  %2616 = vmatprep.subr.bf16.mxu1 %v3542_v56  ;;  %v3614_v53 = vcombine.high %v861_v47, %v865_v48  ;;  %v3742_v56 = vcombine.high %v989_v49, %v993_v50 }
 0x28c   :  { %2659 = vmatprep.subr.bf16.mxu0 %v3670_v57  ;;  %v853_v57 = vld [vmem:[#allocation7 + $0x298] sm:$0xff] }
 0x28d   :  { %v3605_v5 = vcombine.low %v853_v57, %v857_v60 }
 0x28e   :  { %2617 = vmatpush1.bf16.msra.mxu1 %v3541_v55  ;;  %v3741_v55 = vcombine.low %v989_v49, %v993_v50  ;;  %v4070_v50 = vld [vmem:[#allocation8 + $0x20] sm:$0xff]  }
 0x28f   :  { %2660 = vmatpush1.bf16.msra.mxu0 %v3669_v63  ;;  %2618 = vmatprep.subr.bf16.mxu1 %v3534_v0  ;;  %v3606_v63 = vcombine.high %v853_v57, %v857_v60  ;;  %v3734_v0 = vcombine.high %v981_v61, %v985_v62 }
 0x290   :  { %2661 = vmatprep.subr.bf16.mxu0 %v3662_v1  ;;  %v845_v1 = vld [vmem:[#allocation7 + $0x258] sm:$0xff] }
 0x291   :  { %v3597_v13 = vcombine.low %v845_v1, %v849_v2 }
 0x292   :  { %2619 = vmatpush1.bf16.msra.mxu1 %v3533_v6  ;;  %v3733_v6 = vcombine.low %v981_v61, %v985_v62  ;;  %v4072_v62 = vld [vmem:[#allocation8 + $0x18] sm:$0xff]  }
 0x293   :  { %2662 = vmatpush1.bf16.msra.mxu0 %v3661_v7  ;;  %2620 = vmatprep.subr.bf16.mxu1 %v3526_v8  ;;  %v3598_v7 = vcombine.high %v845_v1, %v849_v2  ;;  %v3726_v8 = vcombine.high %v973_v3, %v977_v4  ;;  %v4089_v1 = vld [vmem:[#allocation8 + $0xd0] sm:$0xff]  }
 0x294   :  { %2663 = vmatprep.subr.bf16.mxu0 %v3654_v9  ;;  %v837_v9 = vld [vmem:[#allocation7 + $0x218] sm:$0xff] }
 0x296   :  { %2621 = vmatpush1.bf16.msra.mxu1 %v3525_v14  ;;  %v3725_v14 = vcombine.low %v973_v3, %v977_v4  ;;  %v4074_v3 = vld [vmem:[#allocation8 + $0x10] sm:$0xff]  }
 0x297   :  { %2664 = vmatpush1.bf16.msra.mxu0 %v3653_v15  ;;  %2622 = vmatprep.subr.bf16.mxu1 %v3646_v16  ;;  %v3590_v15 = vcombine.high %v837_v9, %v841_v10  ;;  %v3718_v16 = vcombine.high %v965_v11, %v969_v12  ;;  %v4092_v11 = vld [vmem:[#allocation8 + $0x88] sm:$0xff]   ;;  %v4093_v12 = vld [vmem:[#allocation8 + $0xc0] sm:$0xff]  }
 0x298   :  { %2665 = vmatprep.subr.bf16.mxu0 %v3774_v17  ;;  %v3589_v17 = vcombine.low %v837_v9, %v841_v10  ;;  %v4077_v10 = vld [vmem:[#allocation8 + $0x40] sm:$0xff]  }
 0x29a   :  { %2623 = vmatpush2.bf16.msra.mxu1 %v3645_v22  ;;  %v4386_v22 = vld [vmem:[%s4423_s6] sm:$0xff] }
 0x29b   :  { %2666 = vmatpush2.bf16.msra.mxu0 %v3773_v23  ;;  %2624 = vmatprep.subr.bf16.mxu1 %v3638_v24  ;;  %v4065_v23 = vld [vmem:[#allocation8 + $0x70] sm:$0xff]   ;;  %v4080_v24 = vld [vmem:[#allocation8 + $0xb8] sm:$0xff]   ;;  %v1031_v57 = vrot.slane %v4386_v22, %v4327_v29 }
 0x29c   :  { %2667 = vmatprep.subr.bf16.mxu0 %v3766_v25  ;;  %v1035_v25 = vrot.slane %v4386_v22, %v4324_v28  ;;  %v4090_v29 = vld [vmem:[#allocation8 + $0x90] sm:$0xff]  }
 0x29e   :  { %2625 = vmatpush2.bf16.msra.mxu1 %v3637_v33 }
 0x29f   :  { %2668 = vmatpush2.bf16.msra.mxu0 %v3765_v34  ;;  %2626 = vmatprep.subr.bf16.mxu1 %v3630_v35  ;;  %v4067_v35 = vld [vmem:[#allocation8 + $0x68] sm:$0xff]  }
 0x2a0   :  { %2669 = vmatprep.subr.bf16.mxu0 %v3758_v36  ;;  %v4082_v36 = vld [vmem:[#allocation8 + $0xb0] sm:$0xff]  }
 0x2a2   :  { %2627 = vmatpush2.bf16.msra.mxu1 %v3629_v44 }
 0x2a3   :  { %2670 = vmatpush2.bf16.msra.mxu0 %v3757_v40  ;;  %2628 = vmatprep.subr.bf16.mxu1 %v3622_v45  ;;  %v4069_v40 = vld [vmem:[#allocation8 + $0x60] sm:$0xff]  }
 0x2a4   :  { %2671 = vmatprep.subr.bf16.mxu0 %v3750_v46  ;;  %v4085_v46 = vld [vmem:[#allocation8 + $0xe0] sm:$0xff]  }
 0x2a6   :  { %2629 = vmatpush2.bf16.msra.mxu1 %v3621_v51  ;;  %v4071_v51 = vld [vmem:[#allocation8 + $0x58] sm:$0xff]  }
 0x2a7   :  { %2672 = vmatpush2.bf16.msra.mxu0 %v3749_v52  ;;  %2630 = vmatprep.subr.bf16.mxu1 %v3614_v53  ;;  %v4086_v52 = vld [vmem:[#allocation8 + $0xa0] sm:$0xff]  }
 0x2a8   :  { %2673 = vmatprep.subr.bf16.mxu0 %v3742_v56  ;;  %v4087_v56 = vld [vmem:[#allocation8 + $0xd8] sm:$0xff]  }
 0x2aa   :  { %2631 = vmatpush2.bf16.msra.mxu1 %v3613_v54 }
 0x2ab   :  { %2674 = vmatpush2.bf16.msra.mxu0 %v3741_v55  ;;  %2632 = vmatprep.subr.bf16.mxu1 %v3606_v63  ;;  %v4073_v55 = vld [vmem:[#allocation8 + $0x50] sm:$0xff]   ;;  %v4088_v63 = vld [vmem:[#allocation8 + $0x98] sm:$0xff]  }
 0x2ac   :  { %2675 = vmatprep.subr.bf16.mxu0 %v3734_v0 }
 0x2ae   :  { %2633 = vmatpush2.bf16.msra.mxu1 %v3605_v5  ;;  %v4075_v5 = vld [vmem:[#allocation8 + $0x48] sm:$0xff]  }
 0x2af   :  { %2676 = vmatpush2.bf16.msra.mxu0 %v3733_v6  ;;  %2634 = vmatprep.subr.bf16.mxu1 %v3598_v7  ;;  %v4091_v6 = vld [vmem:[#allocation8 + $0xc8] sm:$0xff]  }
 0x2b0   :  { %2677 = vmatprep.subr.bf16.mxu0 %v3726_v8  ;;  %v4076_v8 = vld [vmem:[#allocation8 + $0x8] sm:$0xff]  }
 0x2b2   :  { %2635 = vmatpush2.bf16.msra.mxu1 %v3597_v13 }
 0x2b3   :  { %2678 = vmatpush2.bf16.msra.mxu0 %v3725_v14  ;;  %2636 = vmatprep.subr.bf16.mxu1 %v3590_v15  ;;  %v4078_v14 = vld [vmem:[#allocation8] sm:$0xff]  }
 0x2b4   :  { %2679 = vmatprep.subr.bf16.mxu0 %v3718_v16  ;;  %v4094_v16 = vld [vmem:[#allocation8 + $0x80] sm:$0xff]  }
 0x2b6   :  { %2637 = vmatpush2.bf16.msra.mxu1 %v3589_v17  ;;  %v4095_v17 = vld [vmem:[#allocation8 + $0x178] sm:$0xff]  }
 0x2b7   :  { %2680 = vmatpush2.bf16.msra.mxu0 %v3717_v18  ;;  %3840 = vmatprep.subr.bf16.mxu1 %v4063_v19  ;;  %v4111_v18 = vld [vmem:[#allocation8 + $0x1f8] sm:$0xff]  }
 0x2b8   :  { %3862 = vmatprep.subr.bf16.mxu0 %v4079_v20  ;;  %v4096_v20 = vld [vmem:[#allocation8 + $0x138] sm:$0xff]  }
 0x2b9   :  { %2639 = vmatmul.mubr.bf16.vlgmr.msra.gmra.mxu1 %v4365_v41  ;;  %v2382_v30 = vpop.f32.mrf.mxu1  ;;  %v2425_v31 = vpop.f32.mrf.mxu0  ;;  %v4068_v41 = vld [vmem:[#allocation8 + $0x28] sm:$0xff]  }
 0x2ba   :  { %2682 = vmatmul.mubr.bf16.vlgmr.msra.gmra.mxu0 %v4367_v42  ;;  %3841 = vmatpush3.bf16.msra.mxu1 %v4064_v21  ;;  %v4084_v42 = vld [vmem:[#allocation8 + $0xa8] sm:$0xff]   ;;  %v2383_v2 = vadd.f32 %v2382_v30, %v1031_v57  ;;  %v4101_v30 = vld [vmem:[#allocation8 + $0x160] sm:$0xff]  }
 0x2bb   :  { %v2384_v33 = vpop.f32.mrf.mxu1  ;;  %v2427_v34 = vpop.f32.mrf.mxu0  ;;  %3842 = vmatprep.subr.bf16.mxu1 %v4065_v23  ;;  %3863 = vmatpush3.bf16.msra.mxu0 %v4080_v24  ;;  %v4097_v23 = vld [vmem:[#allocation8 + $0x170] sm:$0xff]  }
 0x2bc   :  { %v2385_v39 = vadd.f32 %v2384_v33, %v1035_v25  ;;  %3864 = vmatprep.subr.bf16.mxu0 %v4081_v26  ;;  %v2426_v7 = vadd.f32 %v2425_v31, %v2383_v2  ;;  %v4098_v24 = vld [vmem:[#allocation8 + $0x130] sm:$0xff]   ;;  %v4100_v26 = vld [vmem:[#allocation8 + $0x128] sm:$0xff]   ;;  %v4102_v31 = vld [vmem:[#allocation8 + $0x120] sm:$0xff]  }
 0x2bd   :  { %v2386_v28 = vpop.f32.mrf.mxu1  ;;  %v2429_v38 = vpop.f32.mrf.mxu0  ;;  %v4104_v33 = vld [vmem:[#allocation8 + $0x118] sm:$0xff]  }
 0x2be   :  { %v2428_v43 = vadd.f32 %v2427_v34, %v2385_v39  ;;  %3843 = vmatpush3.bf16.msra.mxu1 %v4066_v32  ;;  %v2387_v54 = vadd.f32 %v2386_v28, %v1031_v57  ;;  %v2692_v13 = vmul.f32 0.2, %v2426_v7  ;;  %v4103_v32 = vld [vmem:[#allocation8 + $0x158] sm:$0xff]   ;;  %v4105_v34 = vld [vmem:[#allocation8 + $0x150] sm:$0xff]   ;;  %v4108_v39 = vld [vmem:[#allocation8 + $0x108] sm:$0xff]  }
 0x2bf   :  { %v2388_v44 = vpop.f32.mrf.mxu1  ;;  %3844 = vmatprep.subr.bf16.mxu1 %v4067_v35  ;;  %3865 = vmatpush3.bf16.msra.mxu0 %v4082_v36  ;;  %v2431_v47 = vpop.f32.mrf.mxu0  ;;  %v4106_v35 = vld [vmem:[#allocation8 + $0x110] sm:$0xff]   ;;  %v4107_v36 = vld [vmem:[#allocation8 + $0x148] sm:$0xff]   ;;  %v4110_v28 = vld [vmem:[#allocation8 + $0x100] sm:$0xff]  }
 0x2c0   :  { %v2389_v45 = vadd.f32 %v2388_v44, %v1035_v25  ;;  %3866 = vmatprep.subr.bf16.mxu0 %v4083_v37  ;;  %v2693_v48 = vmul.f32 0.2, %v2428_v43  ;;  %v2430_v4 = vadd.f32 %v2429_v38, %v2387_v54  ;;  %v2708_v19 = vmax.f32 %v2426_v7, %v2692_v13  ;;  %v4099_v25 = vld [vmem:[#allocation8 + $0x168] sm:$0xff]   ;;  %v4109_v37 = vld [vmem:[#allocation8 + $0x140] sm:$0xff]   ;;  %v4112_v2 = vld [vmem:[#allocation8 + $0x1b8] sm:$0xff]  }
 0x2c1   :  { %v1039_v38 = vrot.slane %v4386_v22, %v334_v59  ;;  %v4117_v7 = vld [vmem:[#allocation8 + $0x1e0] sm:$0xff]   ;;  %v4123_v13 = vld [vmem:[#allocation8 + $0x1c8] sm:$0xff]  }
 0x2c2   :  { %v2432_v49 = vadd.f32 %v2431_v47, %v2389_v45  ;;  %3845 = vmatpush3.bf16.msra.mxu1 %v4068_v41  ;;  %v2709_v60 = vmax.f32 %v2428_v43, %v2693_v48  ;;  %v2700_v9 = vmul.f32 0.2, %v2430_v4  ;;  %v1043_v43 = vrot.slane %v4386_v22, %v338_v58 }
 0x2c3   :  { %3846 = vmatprep.subr.bf16.mxu1 %v4069_v40  ;;  %3867 = vmatpush3.bf16.msra.mxu0 %v4084_v42 }
 0x2c4   :  { %v2701_v53 = vmul.f32 0.2, %v2432_v49  ;;  %3868 = vmatprep.subr.bf16.mxu0 %v4085_v46  ;;  %v2716_v15 = vmax.f32 %v2430_v4, %v2700_v9  ;;  %v4113_v4 = vld [vmem:[#allocation8 + $0x1f0] sm:$0xff]   ;;  %v4119_v9 = vld [vmem:[#allocation8 + $0x1d8] sm:$0xff]  }
 0x2c6   :  { %v2717_v61 = vmax.f32 %v2432_v49, %v2701_v53  ;;  %3847 = vmatpush3.bf16.msra.mxu1 %v4070_v50  ;;  %v2724_v21 = vpack.c.bf16 %v2716_v15, %v2708_v19  ;;  %v4125_v15 = vld [vmem:[#allocation8 + $0x1c0] sm:$0xff]  }
 0x2c7   :  { %3848 = vmatprep.subr.bf16.mxu1 %v4071_v51  ;;  %3869 = vmatpush3.bf16.msra.mxu0 %v4086_v52 }
 0x2c8   :  { %v2725_v0 = vpack.c.bf16 %v2717_v61, %v2709_v60  ;;  %3870 = vmatprep.subr.bf16.mxu0 %v4087_v56 }
 0x2ca   :  { %3849 = vmatpush3.bf16.msra.mxu1 %v4072_v62  ;;  %3283 = vmatprep.mubr.bf16.mxu1 %v2725_v0 }
 0x2cb   :  { %3850 = vmatprep.subr.bf16.mxu1 %v4073_v55  ;;  %3871 = vmatpush3.bf16.msra.mxu0 %v4088_v63 }
 0x2cc   :  { %3872 = vmatprep.subr.bf16.mxu0 %v4089_v1 }
 0x2ce   :  { %3851 = vmatpush3.bf16.msra.mxu1 %v4074_v3 }
 0x2cf   :  { %3852 = vmatprep.subr.bf16.mxu1 %v4075_v5  ;;  %3873 = vmatpush3.bf16.msra.mxu0 %v4090_v29  ;;  %v4114_v5 = vld [vmem:[#allocation8 + $0x1b0] sm:$0xff]   ;;  %v4115_v29 = vld [vmem:[#allocation8 + $0x1e8] sm:$0xff]  }
 0x2d0   :  { %3874 = vmatprep.subr.bf16.mxu0 %v4091_v6  ;;  %v4116_v6 = vld [vmem:[#allocation8 + $0x1a8] sm:$0xff]  }
 0x2d2   :  { %3853 = vmatpush3.bf16.msra.mxu1 %v4076_v8  ;;  %v4118_v8 = vld [vmem:[#allocation8 + $0x1a0] sm:$0xff]  }
 0x2d3   :  { %3854 = vmatprep.subr.bf16.mxu1 %v4077_v10  ;;  %3875 = vmatpush3.bf16.msra.mxu0 %v4092_v11  ;;  %v4120_v10 = vld [vmem:[#allocation8 + $0x198] sm:$0xff]   ;;  %v4121_v11 = vld [vmem:[#allocation8 + $0x1d0] sm:$0xff]  }
 0x2d4   :  { %3876 = vmatprep.subr.bf16.mxu0 %v4093_v12  ;;  %v4122_v12 = vld [vmem:[#allocation8 + $0x190] sm:$0xff]  }
 0x2d6   :  { %3855 = vmatpush3.bf16.msra.mxu1 %v4078_v14  ;;  %v4124_v14 = vld [vmem:[#allocation8 + $0x188] sm:$0xff]  }
 0x2d7   :  { %3877 = vmatpush3.bf16.msra.mxu0 %v4094_v16  ;;  %3884 = vmatprep.subr.bf16.mxu1 %v4095_v17  ;;  %v4126_v16 = vld [vmem:[#allocation8 + $0x180] sm:$0xff]   ;;  %v1046_v17 = vsub.s32 4, %v4321_v27 }
 0x2d8   :  { %3906 = vmatprep.subr.bf16.mxu0 %v4111_v18  ;;  %v1050_v18 = vsub.s32 5, %v4321_v27 }
 0x2d9   :  { %3284 = vmatmul.mubr.bf16.vlgmr.msra.gmra.mxu1 %v2724_v21  ;;  %v1047_v19 = vrot.slane %v4386_v22, %v1046_v17 }
 0x2da   :  { %3885 = vmatpush3.bf16.msra.mxu1 %v4096_v20  ;;  %v1051_v20 = vrot.slane %v4386_v22, %v1050_v18 }
 0x2db   :  { %3886 = vmatprep.subr.bf16.mxu1 %v4097_v23 }
 0x2de   :  { %3887 = vmatpush3.bf16.msra.mxu1 %v4098_v24 }
 0x2df   :  { %3888 = vmatprep.subr.bf16.mxu1 %v4099_v25 }
 0x2e2   :  { %3889 = vmatpush3.bf16.msra.mxu1 %v4100_v26 }
 0x2e3   :  { %3890 = vmatprep.subr.bf16.mxu1 %v4101_v30 }
 0x2e6   :  { %3891 = vmatpush3.bf16.msra.mxu1 %v4102_v31 }
 0x2e7   :  { %3892 = vmatprep.subr.bf16.mxu1 %v4103_v32 }
 0x2ea   :  { %3893 = vmatpush3.bf16.msra.mxu1 %v4104_v33 }
 0x2eb   :  { %3894 = vmatprep.subr.bf16.mxu1 %v4105_v34 }
 0x2ee   :  { %3895 = vmatpush3.bf16.msra.mxu1 %v4106_v35 }
 0x2ef   :  { %3896 = vmatprep.subr.bf16.mxu1 %v4107_v36 }
 0x2f2   :  { %3897 = vmatpush3.bf16.msra.mxu1 %v4108_v39 }
 0x2f3   :  { %3898 = vmatprep.subr.bf16.mxu1 %v4109_v37 }
 0x2f6   :  { %3899 = vmatpush3.bf16.msra.mxu1 %v4110_v28 }
 0x2f9   :  { %v2468_v41 = vpop.f32.mrf.mxu1  ;;  %v2511_v44 = vpop.f32.mrf.mxu0 }
 0x2fa   :  { %v2469_v40 = vadd.f32 %v2468_v41, %v1039_v38 }
 0x2fb   :  { %v2470_v42 = vpop.f32.mrf.mxu1  ;;  %v2513_v45 = vpop.f32.mrf.mxu0 }
 0x2fc   :  { %v2471_v46 = vadd.f32 %v2470_v42, %v1043_v43  ;;  %v2512_v51 = vadd.f32 %v2511_v44, %v2469_v40 }
 0x2fd   :  { %v2472_v47 = vpop.f32.mrf.mxu1  ;;  %v2515_v48 = vpop.f32.mrf.mxu0 }
 0x2fe   :  { %v2514_v49 = vadd.f32 %v2513_v45, %v2471_v46  ;;  %v2473_v50 = vadd.f32 %v2472_v47, %v1039_v38  ;;  %v2694_v62 = vmul.f32 0.2, %v2512_v51 }
 0x2ff   :  { %v2474_v52 = vpop.f32.mrf.mxu1  ;;  %v2517_v57 = vpop.f32.mrf.mxu0 }
 0x300   :  { %v2516_v53 = vadd.f32 %v2515_v48, %v2473_v50  ;;  %v2475_v56 = vadd.f32 %v2474_v52, %v1043_v43  ;;  %v2695_v59 = vmul.f32 0.2, %v2514_v49  ;;  %v2710_v0 = vmax.f32 %v2512_v51, %v2694_v62 }
 0x301   :  { %v1054_v50 = vsub.s32 6, %v4321_v27  ;;  %v1058_v51 = vsub.s32 7, %v4321_v27 }
 0x302   :  { %v2702_v60 = vmul.f32 0.2, %v2516_v53  ;;  %v2518_v61 = vadd.f32 %v2517_v57, %v2475_v56  ;;  %v2711_v55 = vmax.f32 %v2514_v49, %v2695_v59 }
 0x303   :  { %v1055_v52 = vrot.slane %v4386_v22, %v1054_v50 }
 0x304   :  { %v2703_v58 = vmul.f32 0.2, %v2518_v61  ;;  %v2718_v54 = vmax.f32 %v2516_v53, %v2702_v60  ;;  %v1059_v53 = vrot.slane %v4386_v22, %v1058_v51 }
 0x306   :  { %v2719_v63 = vmax.f32 %v2518_v61, %v2703_v58  ;;  %v2726_v3 = vpack.c.bf16 %v2718_v54, %v2710_v0 }
 0x308   :  { %v2727_v1 = vpack.c.bf16 %v2719_v63, %v2711_v55 }
 0x30a   :  { %3324 = vmatprep.mubr.bf16.mxu0 %v2727_v1 }
 0x30b   :  { %3325 = vmatmul.mubr.bf16.vlgmr.msra.gmra.mxu0 %v2726_v3 }
 0x30c   :  { %3907 = vmatpush3.bf16.msra.mxu0 %v4112_v2 }
 0x30d   :  { %3908 = vmatprep.subr.bf16.mxu0 %v4113_v4 }
 0x310   :  { %3909 = vmatpush3.bf16.msra.mxu0 %v4114_v5 }
 0x311   :  { %3910 = vmatprep.subr.bf16.mxu0 %v4115_v29 }
 0x314   :  { %3911 = vmatpush3.bf16.msra.mxu0 %v4116_v6 }
 0x315   :  { %3912 = vmatprep.subr.bf16.mxu0 %v4117_v7 }
 0x318   :  { %3913 = vmatpush3.bf16.msra.mxu0 %v4118_v8 }
 0x319   :  { %3914 = vmatprep.subr.bf16.mxu0 %v4119_v9 }
 0x31c   :  { %3915 = vmatpush3.bf16.msra.mxu0 %v4120_v10 }
 0x31d   :  { %3916 = vmatprep.subr.bf16.mxu0 %v4121_v11 }
 0x320   :  { %3917 = vmatpush3.bf16.msra.mxu0 %v4122_v12 }
 0x321   :  { %3918 = vmatprep.subr.bf16.mxu0 %v4123_v13 }
 0x324   :  { %3919 = vmatpush3.bf16.msra.mxu0 %v4124_v14 }
 0x325   :  { %3920 = vmatprep.subr.bf16.mxu0 %v4125_v15 }
 0x328   :  { %3921 = vmatpush3.bf16.msra.mxu0 %v4126_v16 }
 0x339   :  { %v2554_v21 = vpop.f32.mrf.mxu1 }
 0x33a   :  { %v2597_v23 = vpop.f32.mrf.mxu0  ;;  %v2555_v24 = vadd.f32 %v2554_v21, %v1047_v19 }
 0x33b   :  { %v2556_v25 = vpop.f32.mrf.mxu1 }
 0x33c   :  { %v2557_v26 = vadd.f32 %v2556_v25, %v1051_v20  ;;  %v2599_v30 = vpop.f32.mrf.mxu0  ;;  %v2598_v35 = vadd.f32 %v2597_v23, %v2555_v24  ;;  %v3775_v24 = vld [vmem:[%s4425_s8] ss:$0 sm:$0xff]  ;;  %s4252_s8 = smov [#allocation10]  }
 0x33d   :  { %v2558_v31 = vpop.f32.mrf.mxu1  ;;  %s3424_s18 = sshll.u32 %s4252_s8, 4  ;;  %s3425_s18 = int_to_ptr.vmem [resolvable:$true] %s3424_s18 }
 0x33e   :  { %v2600_v32 = vadd.f32 %v2599_v30, %v2557_v26  ;;  %v2559_v33 = vadd.f32 %v2558_v31, %v1047_v19  ;;  %v2601_v34 = vpop.f32.mrf.mxu0  ;;  %v2696_v44 = vmul.f32 0.2, %v2598_v35  ;;  %s4211_s21 = scalar_lea.vmem %s3425_s18, 256  ;;  %p4216_p7 = scmp.lt.s32.totalorder %s3425_s18, %s3425_s18 }
 0x33f   :  { %v2560_v36 = vpop.f32.mrf.mxu1  ;;  %p4212_p6 = scmp.ne.s32.totalorder %s3425_s18, %s4211_s21  ;;  %p4217_p8 = scmp.lt.s32.totalorder %s4211_s21, %s4211_s21 }
 0x340   :  { %v2602_v39 = vadd.f32 %v2601_v34, %v2559_v33  ;;  %v2561_v37 = vadd.f32 %v2560_v36, %v1051_v20  ;;  %v2603_v28 = vpop.f32.mrf.mxu0  ;;  %v2697_v38 = vmul.f32 0.2, %v2600_v32  ;;  %v2712_v47 = vmax.f32 %v2598_v35, %v2696_v44 }
 0x341   :  { %p4218_p9 = por %p4217_p8, %p4216_p7 }
 0x342   :  { %v2704_v43 = vmul.f32 0.2, %v2602_v39  ;;  %v2604_v41 = vadd.f32 %v2603_v28, %v2561_v37  ;;  %v2713_v45 = vmax.f32 %v2600_v32, %v2697_v38 }
 0x343   :  { %p4219_p10 = pnand %p4218_p9, %p4212_p6 }
 0x344   :  { %v2705_v40 = vmul.f32 0.2, %v2604_v41  ;;  %v2720_v42 = vmax.f32 %v2602_v39, %v2704_v43 }
 0x346   :  { %v2721_v46 = vmax.f32 %v2604_v41, %v2705_v40  ;;  %v2728_v49 = vpack.c.bf16 %v2720_v42, %v2712_v47 }
 0x348   :  { %v2729_v48 = vpack.c.bf16 %v2721_v46, %v2713_v45 }
 0x34a   :  { %3365 = vmatprep.mubr.bf16.mxu1 %v2729_v48 }
 0x34b   :  { %3366 = vmatmul.mubr.bf16.vlgmr.msra.gmra.mxu1 %v2728_v49 }
 0x379   :  { %v2640_v56 = vpop.f32.mrf.mxu1 }
 0x37a   :  { %v2683_v57 = vpop.f32.mrf.mxu0  ;;  %v2641_v59 = vadd.f32 %v2640_v56, %v1055_v52 }
 0x37b   :  { %v2642_v60 = vpop.f32.mrf.mxu1 }
 0x37c   :  { %v2643_v61 = vadd.f32 %v2642_v60, %v1059_v53  ;;  %v2685_v62 = vpop.f32.mrf.mxu0  ;;  %v2684_v0 = vadd.f32 %v2683_v57, %v2641_v59 }
 0x37d   :  { %v2644_v58 = vpop.f32.mrf.mxu1 }
 0x37e   :  { %v2686_v54 = vadd.f32 %v2685_v62, %v2643_v61  ;;  %v2645_v55 = vadd.f32 %v2644_v58, %v1055_v52  ;;  %v2687_v63 = vpop.f32.mrf.mxu0  ;;  %v2698_v6 = vmul.f32 0.2, %v2684_v0 }
 0x37f   :  { %v2646_v1 = vpop.f32.mrf.mxu1 }
 0x380   :  { %v2688_v2 = vadd.f32 %v2687_v63, %v2645_v55  ;;  %v2647_v3 = vadd.f32 %v2646_v1, %v1059_v53  ;;  %v2689_v4 = vpop.f32.mrf.mxu0  ;;  %v2699_v27 = vmul.f32 0.2, %v2686_v54  ;;  %v2714_v10 = vmax.f32 %v2684_v0, %v2698_v6 }
 0x382   :  { %v2706_v5 = vmul.f32 0.2, %v2688_v2  ;;  %v2690_v29 = vadd.f32 %v2689_v4, %v2647_v3  ;;  %v2715_v8 = vmax.f32 %v2686_v54, %v2699_v27 }
 0x384   :  { %v2707_v22 = vmul.f32 0.2, %v2690_v29  ;;  %v2722_v7 = vmax.f32 %v2688_v2, %v2706_v5 }
 0x386   :  { %v2723_v9 = vmax.f32 %v2690_v29, %v2707_v22  ;;  %v2730_v12 = vpack.c.bf16 %v2722_v7, %v2714_v10 }
 0x388   :  { %v2731_v11 = vpack.c.bf16 %v2723_v9, %v2715_v8 }
 0x38a   :  { %3406 = vmatprep.mubr.bf16.mxu0 %v2731_v11 }
 0x38b   :  { %3407 = vmatmul.mubr.bf16.vlgmr.msra.gmra.mxu0 %v2730_v12 }
 0x399   :  { %v3856_v13 = vpop.f32.mrf.mxu1 }
 0x39b   :  { %v3857_v14 = vpop.f32.mrf.mxu1 }
 0x39c   :  { %v3858_v23 = vadd.f32 %v3857_v14, %v3856_v13 }
 0x39d   :  { %v3859_v15 = vpop.f32.mrf.mxu1 }
 0x39e   :  { %v3286_v31 = vadd.f32 %v3858_v23, %v3775_v24 }
 0x39f   :  { %v3860_v16 = vpop.f32.mrf.mxu1 }
 0x3a0   :  { %v3861_v32 = vadd.f32 %v3860_v16, %v3859_v15 }
 0x3a2   :  { %v3289_v28 = vadd.f32 %v3861_v32, %v3775_v24 }
 0x3cb   :  { %v3878_v17 = vpop.f32.mrf.mxu0 }
 0x3cd   :  { %v3879_v19 = vpop.f32.mrf.mxu0 }
 0x3ce   :  { %v3880_v26 = vadd.f32 %v3879_v19, %v3878_v17 }
 0x3cf   :  { %v3881_v21 = vpop.f32.mrf.mxu0 }
 0x3d0   :  { %v3327_v36 = vadd.f32 %v3880_v26, %v3286_v31 }
 0x3d1   :  { %v3882_v30 = vpop.f32.mrf.mxu0 }
 0x3d2   :  { %v3883_v39 = vadd.f32 %v3882_v30, %v3881_v21 }
 0x3d4   :  { %v3330_v40 = vadd.f32 %v3883_v39, %v3289_v28 }
 0x40b   :  { %v3900_v18 = vpop.f32.mrf.mxu1 }
 0x40d   :  { %v3901_v20 = vpop.f32.mrf.mxu1 }
 0x40e   :  { %v3902_v33 = vadd.f32 %v3901_v20, %v3900_v18 }
 0x40f   :  { %v3903_v25 = vpop.f32.mrf.mxu1 }
 0x410   :  { %v3368_v38 = vadd.f32 %v3902_v33, %v3327_v36 }
 0x411   :  { %v3904_v34 = vpop.f32.mrf.mxu1 }
 0x412   :  { %v3905_v43 = vadd.f32 %v3904_v34, %v3903_v25 }
 0x414   :  { %v3371_v46 = vadd.f32 %v3905_v43, %v3330_v40 }
 0x44b   :  { %v3922_v35 = vpop.f32.mrf.mxu0 }
 0x44d   :  { %v3923_v37 = vpop.f32.mrf.mxu0 }
 0x44e   :  { %v3924_v41 = vadd.f32 %v3923_v37, %v3922_v35 }
 0x44f   :  { %v3925_v44 = vpop.f32.mrf.mxu0 }
 0x450   :  { %v3409_v42 = vadd.f32 %v3924_v41, %v3368_v38 }
 0x451   :  { %v3926_v45 = vpop.f32.mrf.mxu0 }
 0x452   :  { %4127 = vtanh.f32 %v3409_v42  ;;  %v3927_v47 = vadd.f32 %v3926_v45, %v3925_v44 }
 0x454   :  { %v3412_v48 = vadd.f32 %v3927_v47, %v3371_v46 }
 0x456   :  { %4129 = vtanh.f32 %v3412_v48 }
 0x45f   :  { %v4128_v49 = vpop.eup %4127 }
 0x460   :  { %3417 = vst [vmem:[#allocation10] sm:$0xff] %v4128_v49 }
 0x463   :  { %v4130_v50 = vpop.eup %4129 }
 0x464   :  { %3418 = vst [vmem:[#allocation10 + $0x8] sm:$0xff] %v4130_v50 }
 0x465   :  { %4222 = shalt.err (!%p4219_p10)
}
 0x466   :  { %3430 = dma.vmem_to_hbm [thread:$0]  %s3425_s18, 256, %s4426_s9, [#allocation4], %s4243_s19, %s4243_s19, %s4244_s20  }
 0x467   :  { %4237 = dma.done.wait [#allocation4], 256  }
 0x468   :  { %4238 = vsyncadd [#allocation4], 4294967040 }
 0x469   :  { %3434 = vsyncpa [#allocation3], 1 }
 0x46a   :  { %3435 = vsyncpa [#allocation6], 1 }
 0x46b   :  { %3436 = vsyncpa [#allocation9], 1 }
 0x46c   :  { %3437 = vsyncpa [#allocation4], 1 }

</bundles_post_ra>
